<compile_context>
chip_gen: v5e
topology: v5e:2x2
jax: 0.10.0
libtpu: 0.0.40
codegen_flags: <defaults>
</compile_context>

<pallas_src>
import jax
import jax.numpy as jnp
from jax import lax
from jax.experimental import pallas as pl
from jax.experimental.pallas import tpu as pltpu

# ----------------------------- model dims -----------------------------------
EMB_DIM = 32
HID_DIM = 32
N_LAYERS = 2
VOCAB = 16          # input_dim (token-id vocabulary)
BATCH = 4
B_PAD = 8           # pad batch to a full sublane group
SRC_LEN = 8


def _vmem_spec():
    # Tiny full-array blocks resident in VMEM, single kernel invocation.
    return pl.BlockSpec(memory_space=pltpu.MemorySpace.VMEM)


# --------------------------- fused encoder kernel ----------------------------
def _encoder_kernel(src_oh_ref, emb_ref, w0_ref, b0_ref, w1_ref, b1_ref,
                    out_ref):
    """Fused Encoder.forward.

    src_oh: [SRC_LEN, B_PAD, VOCAB] f32 one-hot token ids
    emb:    [VOCAB, EMB_DIM]                     (frozen embedding table)
    w0:     [EMB_DIM + HID_DIM, 4*HID_DIM]       (concat of W_ih^T ; W_hh^T)
    w1:     [2*HID_DIM,         4*HID_DIM]
    b0,b1:  [1, 4*HID_DIM]                       (b_ih + b_hh folded)
    out:    [B_PAD, 4*HID_DIM]  = [h0 | h1 | c0 | c1]  (lane-dense, one vst)
    """
    H = HID_DIM
    emb_tbl = emb_ref[...]
    w0 = w0_ref[...]
    b0 = b0_ref[...]
    w1 = w1_ref[...]
    b1 = b1_ref[...]

    def lstm_cell(xh, c, w, b):
        # xh: [B_PAD, in+H] -> one merged gate matmul, PyTorch gate order i,f,g,o.
        gates = jnp.dot(xh, w, preferred_element_type=jnp.float32) + b
        i = jax.nn.sigmoid(gates[:, 0 * H:1 * H])
        f = jax.nn.sigmoid(gates[:, 1 * H:2 * H])
        g = jnp.tanh(gates[:, 2 * H:3 * H])
        o = jax.nn.sigmoid(gates[:, 3 * H:4 * H])
        c_new = f * c + i * g
        h_new = o * jnp.tanh(c_new)
        return h_new, c_new

    def step(t, carry):
        h0, c0, h1, c1 = carry
        oh = src_oh_ref[t]                                        # [B_PAD, VOCAB]
        x = jnp.dot(oh, emb_tbl, preferred_element_type=jnp.float32)  # [B_PAD, E]
        # TODO(synk): dropout on the embeddings omitted (eval-mode identity).
        h0, c0 = lstm_cell(jnp.concatenate([x, h0], axis=1), c0, w0, b0)
        h1, c1 = lstm_cell(jnp.concatenate([h0, h1], axis=1), c1, w1, b1)
        # TODO(synk): inter-layer LSTM dropout omitted (eval-mode identity).
        return (h0, c0, h1, c1)

    z = jnp.zeros((B_PAD, H), jnp.float32)
    h0, c0, h1, c1 = lax.fori_loop(0, SRC_LEN, step, (z, z, z, z), unroll=True)

    # Single lane-dense [8, 128] store.
    out_ref[...] = jnp.concatenate([h0, h1, c0, c1], axis=1)


# --------------------------- parameter setup ---------------------------------
def _init_params(key):
    def nrm(k, shape, scale=0.08):
        return (scale * jax.random.normal(k, shape)).astype(jnp.float32)

    k = iter(jax.random.split(key, 16))
    # TODO(synk): bert_model(src)[0] approximated by a frozen token-embedding
    # table (the external pretrained BERT cannot be reproduced in-script).
    return {
        "emb": nrm(next(k), (VOCAB, EMB_DIM)),
        # Pre-transposed + concatenated gate weights: [in_dim + H, 4H].
        "w0": nrm(next(k), (EMB_DIM + HID_DIM, 4 * HID_DIM)),
        "b0": nrm(next(k), (1, 4 * HID_DIM)),          # b_ih + b_hh folded
        "w1": nrm(next(k), (2 * HID_DIM, 4 * HID_DIM)),
        "b1": nrm(next(k), (1, 4 * HID_DIM)),
    }


# ------------------------------ forward --------------------------------------
def encoder_forward(params, src):
    """src: [src_len, batch] int32  ->  (hidden, cell) each [n_layers, batch, H]."""
    # Pad batch 4 -> 8 (full sublane group); padded lanes compute harmless junk.
    src_p = jnp.pad(src, ((0, 0), (0, B_PAD - BATCH)))
    src_oh = jax.nn.one_hot(src_p, VOCAB, dtype=jnp.float32)   # [T, B_PAD, V]

    packed = pl.pallas_call(
        _encoder_kernel,
        out_shape=jax.ShapeDtypeStruct((B_PAD, 4 * HID_DIM), jnp.float32),
        in_specs=[_vmem_spec()] * 6,
        out_specs=_vmem_spec(),
    )(src_oh, params["emb"], params["w0"], params["b0"],
      params["w1"], params["b1"])

    H = HID_DIM
    hidden = jnp.stack([packed[:BATCH, 0 * H:1 * H],
                        packed[:BATCH, 1 * H:2 * H]], axis=0)
    cell = jnp.stack([packed[:BATCH, 2 * H:3 * H],
                      packed[:BATCH, 3 * H:4 * H]], axis=0)
    return hidden, cell


encoder_forward_jit = jax.jit(encoder_forward)


# ---------------------------------- main --------------------------------------
if __name__ == "__main__":
    key = jax.random.PRNGKey(0)
    k_params, k_src = jax.random.split(key)

    params = _init_params(k_params)
    src = jax.random.randint(k_src, (SRC_LEN, BATCH), 0, VOCAB, dtype=jnp.int32)

    hidden, cell = encoder_forward_jit(params, src)
    hidden, cell = jax.block_until_ready((hidden, cell))

    assert hidden.shape == (N_LAYERS, BATCH, HID_DIM)
    assert cell.shape == (N_LAYERS, BATCH, HID_DIM)
    assert bool(jnp.all(jnp.isfinite(hidden))) and bool(jnp.all(jnp.isfinite(cell)))
    print("KERNEL_OK")
</pallas_src>

<mosaic_0001>
module attributes {stable_mosaic.version = 11 : i64} {
  func.func @_encoder_kernel(%arg0: memref<8x8x16xf32, #tpu.memory_space<vmem>>, %arg1: memref<16x32xf32, #tpu.memory_space<vmem>>, %arg2: memref<64x128xf32, #tpu.memory_space<vmem>>, %arg3: memref<1x128xf32, #tpu.memory_space<vmem>>, %arg4: memref<64x128xf32, #tpu.memory_space<vmem>>, %arg5: memref<1x128xf32, #tpu.memory_space<vmem>>, %arg6: memref<8x128xf32, #tpu.memory_space<vmem>>) attributes {dimension_semantics = [], scalar_prefetch = 0 : i64, scratch_operands = 0 : i64, tpu.core_type = #tpu.core_type<tc>} {
    %c0 = arith.constant 0 : index
    %c0_0 = arith.constant 0 : index
    %0 = vector.load %arg1[%c0, %c0_0] : memref<16x32xf32, #tpu.memory_space<vmem>>, vector<16x32xf32>
    %c0_1 = arith.constant 0 : index
    %c0_2 = arith.constant 0 : index
    %1 = vector.load %arg2[%c0_1, %c0_2] : memref<64x128xf32, #tpu.memory_space<vmem>>, vector<64x128xf32>
    %c0_3 = arith.constant 0 : index
    %c0_4 = arith.constant 0 : index
    %2 = vector.load %arg3[%c0_3, %c0_4] : memref<1x128xf32, #tpu.memory_space<vmem>>, vector<1x128xf32>
    %c0_5 = arith.constant 0 : index
    %c0_6 = arith.constant 0 : index
    %3 = vector.load %arg4[%c0_5, %c0_6] : memref<64x128xf32, #tpu.memory_space<vmem>>, vector<64x128xf32>
    %c0_7 = arith.constant 0 : index
    %c0_8 = arith.constant 0 : index
    %4 = vector.load %arg5[%c0_7, %c0_8] : memref<1x128xf32, #tpu.memory_space<vmem>>, vector<1x128xf32>
    %cst = arith.constant 0.000000e+00 : f32
    %5 = vector.broadcast %cst : f32 to vector<8x32xf32>
    %c0_i32 = arith.constant 0 : i32
    %6 = arith.index_cast %c0_i32 : i32 to index
    %c0_9 = arith.constant 0 : index
    %c0_10 = arith.constant 0 : index
    %7 = vector.load %arg0[%6, %c0_9, %c0_10] : memref<8x8x16xf32, #tpu.memory_space<vmem>>, vector<1x8x16xf32>
    %8 = vector.shape_cast %7 : vector<1x8x16xf32> to vector<8x16xf32>
    %cst_11 = arith.constant dense<0.000000e+00> : vector<8x32xf32>
    %9 = tpu.matmul %8, %0, %cst_11 {dimension_numbers = #tpu.dot_dimension_numbers<[1], [0], [0], [1], [0, 0, 1, 1], [], []>} : vector<8x16xf32>, vector<16x32xf32>, vector<8x32xf32> -> vector<8x32xf32>
    %10 = tpu.concatenate %9, %5 in 1 : vector<8x32xf32>, vector<8x32xf32> -> vector<8x64xf32>
    %cst_12 = arith.constant dense<0.000000e+00> : vector<8x128xf32>
    %11 = tpu.matmul %10, %1, %cst_12 {dimension_numbers = #tpu.dot_dimension_numbers<[1], [0], [0], [1], [0, 0, 1, 1], [], []>} : vector<8x64xf32>, vector<64x128xf32>, vector<8x128xf32> -> vector<8x128xf32>
    %12 = vector.broadcast %2 : vector<1x128xf32> to vector<8x128xf32>
    %13 = arith.addf %11, %12 : vector<8x128xf32>
    %14 = vector.extract_strided_slice %13 {offsets = [0, 0], sizes = [8, 32], strides = [1, 1]} : vector<8x128xf32> to vector<8x32xf32>
    %15 = arith.negf %14 : vector<8x32xf32>
    %16 = math.exp %15 : vector<8x32xf32>
    %cst_13 = arith.constant 1.000000e+00 : f32
    %17 = vector.broadcast %cst_13 : f32 to vector<8x32xf32>
    %18 = arith.addf %17, %16 : vector<8x32xf32>
    %19 = arith.divf %17, %18 : vector<8x32xf32>
    %20 = vector.extract_strided_slice %13 {offsets = [0, 32], sizes = [8, 32], strides = [1, 1]} : vector<8x128xf32> to vector<8x32xf32>
    %21 = arith.negf %20 : vector<8x32xf32>
    %22 = math.exp %21 : vector<8x32xf32>
    %cst_14 = arith.constant 1.000000e+00 : f32
    %23 = vector.broadcast %cst_14 : f32 to vector<8x32xf32>
    %24 = arith.addf %23, %22 : vector<8x32xf32>
    %25 = arith.divf %23, %24 : vector<8x32xf32>
    %26 = vector.extract_strided_slice %13 {offsets = [0, 64], sizes = [8, 32], strides = [1, 1]} : vector<8x128xf32> to vector<8x32xf32>
    %27 = math.tanh %26 : vector<8x32xf32>
    %28 = vector.extract_strided_slice %13 {offsets = [0, 96], sizes = [8, 32], strides = [1, 1]} : vector<8x128xf32> to vector<8x32xf32>
    %29 = arith.negf %28 : vector<8x32xf32>
    %30 = math.exp %29 : vector<8x32xf32>
    %cst_15 = arith.constant 1.000000e+00 : f32
    %31 = vector.broadcast %cst_15 : f32 to vector<8x32xf32>
    %32 = arith.addf %31, %30 : vector<8x32xf32>
    %33 = arith.divf %31, %32 : vector<8x32xf32>
    %34 = arith.mulf %25, %5 : vector<8x32xf32>
    %35 = arith.mulf %19, %27 : vector<8x32xf32>
    %36 = arith.addf %34, %35 : vector<8x32xf32>
    %37 = math.tanh %36 : vector<8x32xf32>
    %38 = arith.mulf %33, %37 : vector<8x32xf32>
    %39 = tpu.concatenate %38, %5 in 1 : vector<8x32xf32>, vector<8x32xf32> -> vector<8x64xf32>
    %cst_16 = arith.constant dense<0.000000e+00> : vector<8x128xf32>
    %40 = tpu.matmul %39, %3, %cst_16 {dimension_numbers = #tpu.dot_dimension_numbers<[1], [0], [0], [1], [0, 0, 1, 1], [], []>} : vector<8x64xf32>, vector<64x128xf32>, vector<8x128xf32> -> vector<8x128xf32>
    %41 = vector.broadcast %4 : vector<1x128xf32> to vector<8x128xf32>
    %42 = arith.addf %40, %41 : vector<8x128xf32>
    %43 = vector.extract_strided_slice %42 {offsets = [0, 0], sizes = [8, 32], strides = [1, 1]} : vector<8x128xf32> to vector<8x32xf32>
    %44 = arith.negf %43 : vector<8x32xf32>
    %45 = math.exp %44 : vector<8x32xf32>
    %cst_17 = arith.constant 1.000000e+00 : f32
    %46 = vector.broadcast %cst_17 : f32 to vector<8x32xf32>
    %47 = arith.addf %46, %45 : vector<8x32xf32>
    %48 = arith.divf %46, %47 : vector<8x32xf32>
    %49 = vector.extract_strided_slice %42 {offsets = [0, 32], sizes = [8, 32], strides = [1, 1]} : vector<8x128xf32> to vector<8x32xf32>
    %50 = arith.negf %49 : vector<8x32xf32>
    %51 = math.exp %50 : vector<8x32xf32>
    %cst_18 = arith.constant 1.000000e+00 : f32
    %52 = vector.broadcast %cst_18 : f32 to vector<8x32xf32>
    %53 = arith.addf %52, %51 : vector<8x32xf32>
    %54 = arith.divf %52, %53 : vector<8x32xf32>
    %55 = vector.extract_strided_slice %42 {offsets = [0, 64], sizes = [8, 32], strides = [1, 1]} : vector<8x128xf32> to vector<8x32xf32>
    %56 = math.tanh %55 : vector<8x32xf32>
    %57 = vector.extract_strided_slice %42 {offsets = [0, 96], sizes = [8, 32], strides = [1, 1]} : vector<8x128xf32> to vector<8x32xf32>
    %58 = arith.negf %57 : vector<8x32xf32>
    %59 = math.exp %58 : vector<8x32xf32>
    %cst_19 = arith.constant 1.000000e+00 : f32
    %60 = vector.broadcast %cst_19 : f32 to vector<8x32xf32>
    %61 = arith.addf %60, %59 : vector<8x32xf32>
    %62 = arith.divf %60, %61 : vector<8x32xf32>
    %63 = arith.mulf %54, %5 : vector<8x32xf32>
    %64 = arith.mulf %48, %56 : vector<8x32xf32>
    %65 = arith.addf %63, %64 : vector<8x32xf32>
    %66 = math.tanh %65 : vector<8x32xf32>
    %67 = arith.mulf %62, %66 : vector<8x32xf32>
    %c1_i32 = arith.constant 1 : i32
    %68 = arith.index_cast %c1_i32 : i32 to index
    %c0_20 = arith.constant 0 : index
    %c0_21 = arith.constant 0 : index
    %69 = vector.load %arg0[%68, %c0_20, %c0_21] : memref<8x8x16xf32, #tpu.memory_space<vmem>>, vector<1x8x16xf32>
    %70 = vector.shape_cast %69 : vector<1x8x16xf32> to vector<8x16xf32>
    %cst_22 = arith.constant dense<0.000000e+00> : vector<8x32xf32>
    %71 = tpu.matmul %70, %0, %cst_22 {dimension_numbers = #tpu.dot_dimension_numbers<[1], [0], [0], [1], [0, 0, 1, 1], [], []>} : vector<8x16xf32>, vector<16x32xf32>, vector<8x32xf32> -> vector<8x32xf32>
    %72 = tpu.concatenate %71, %38 in 1 : vector<8x32xf32>, vector<8x32xf32> -> vector<8x64xf32>
    %cst_23 = arith.constant dense<0.000000e+00> : vector<8x128xf32>
    %73 = tpu.matmul %72, %1, %cst_23 {dimension_numbers = #tpu.dot_dimension_numbers<[1], [0], [0], [1], [0, 0, 1, 1], [], []>} : vector<8x64xf32>, vector<64x128xf32>, vector<8x128xf32> -> vector<8x128xf32>
    %74 = vector.broadcast %2 : vector<1x128xf32> to vector<8x128xf32>
    %75 = arith.addf %73, %74 : vector<8x128xf32>
    %76 = vector.extract_strided_slice %75 {offsets = [0, 0], sizes = [8, 32], strides = [1, 1]} : vector<8x128xf32> to vector<8x32xf32>
    %77 = arith.negf %76 : vector<8x32xf32>
    %78 = math.exp %77 : vector<8x32xf32>
    %cst_24 = arith.constant 1.000000e+00 : f32
    %79 = vector.broadcast %cst_24 : f32 to vector<8x32xf32>
    %80 = arith.addf %79, %78 : vector<8x32xf32>
    %81 = arith.divf %79, %80 : vector<8x32xf32>
    %82 = vector.extract_strided_slice %75 {offsets = [0, 32], sizes = [8, 32], strides = [1, 1]} : vector<8x128xf32> to vector<8x32xf32>
    %83 = arith.negf %82 : vector<8x32xf32>
    %84 = math.exp %83 : vector<8x32xf32>
    %cst_25 = arith.constant 1.000000e+00 : f32
    %85 = vector.broadcast %cst_25 : f32 to vector<8x32xf32>
    %86 = arith.addf %85, %84 : vector<8x32xf32>
    %87 = arith.divf %85, %86 : vector<8x32xf32>
    %88 = vector.extract_strided_slice %75 {offsets = [0, 64], sizes = [8, 32], strides = [1, 1]} : vector<8x128xf32> to vector<8x32xf32>
    %89 = math.tanh %88 : vector<8x32xf32>
    %90 = vector.extract_strided_slice %75 {offsets = [0, 96], sizes = [8, 32], strides = [1, 1]} : vector<8x128xf32> to vector<8x32xf32>
    %91 = arith.negf %90 : vector<8x32xf32>
    %92 = math.exp %91 : vector<8x32xf32>
    %cst_26 = arith.constant 1.000000e+00 : f32
    %93 = vector.broadcast %cst_26 : f32 to vector<8x32xf32>
    %94 = arith.addf %93, %92 : vector<8x32xf32>
    %95 = arith.divf %93, %94 : vector<8x32xf32>
    %96 = arith.mulf %87, %36 : vector<8x32xf32>
    %97 = arith.mulf %81, %89 : vector<8x32xf32>
    %98 = arith.addf %96, %97 : vector<8x32xf32>
    %99 = math.tanh %98 : vector<8x32xf32>
    %100 = arith.mulf %95, %99 : vector<8x32xf32>
    %101 = tpu.concatenate %100, %67 in 1 : vector<8x32xf32>, vector<8x32xf32> -> vector<8x64xf32>
    %cst_27 = arith.constant dense<0.000000e+00> : vector<8x128xf32>
    %102 = tpu.matmul %101, %3, %cst_27 {dimension_numbers = #tpu.dot_dimension_numbers<[1], [0], [0], [1], [0, 0, 1, 1], [], []>} : vector<8x64xf32>, vector<64x128xf32>, vector<8x128xf32> -> vector<8x128xf32>
    %103 = vector.broadcast %4 : vector<1x128xf32> to vector<8x128xf32>
    %104 = arith.addf %102, %103 : vector<8x128xf32>
    %105 = vector.extract_strided_slice %104 {offsets = [0, 0], sizes = [8, 32], strides = [1, 1]} : vector<8x128xf32> to vector<8x32xf32>
    %106 = arith.negf %105 : vector<8x32xf32>
    %107 = math.exp %106 : vector<8x32xf32>
    %cst_28 = arith.constant 1.000000e+00 : f32
    %108 = vector.broadcast %cst_28 : f32 to vector<8x32xf32>
    %109 = arith.addf %108, %107 : vector<8x32xf32>
    %110 = arith.divf %108, %109 : vector<8x32xf32>
    %111 = vector.extract_strided_slice %104 {offsets = [0, 32], sizes = [8, 32], strides = [1, 1]} : vector<8x128xf32> to vector<8x32xf32>
    %112 = arith.negf %111 : vector<8x32xf32>
    %113 = math.exp %112 : vector<8x32xf32>
    %cst_29 = arith.constant 1.000000e+00 : f32
    %114 = vector.broadcast %cst_29 : f32 to vector<8x32xf32>
    %115 = arith.addf %114, %113 : vector<8x32xf32>
    %116 = arith.divf %114, %115 : vector<8x32xf32>
    %117 = vector.extract_strided_slice %104 {offsets = [0, 64], sizes = [8, 32], strides = [1, 1]} : vector<8x128xf32> to vector<8x32xf32>
    %118 = math.tanh %117 : vector<8x32xf32>
    %119 = vector.extract_strided_slice %104 {offsets = [0, 96], sizes = [8, 32], strides = [1, 1]} : vector<8x128xf32> to vector<8x32xf32>
    %120 = arith.negf %119 : vector<8x32xf32>
    %121 = math.exp %120 : vector<8x32xf32>
    %cst_30 = arith.constant 1.000000e+00 : f32
    %122 = vector.broadcast %cst_30 : f32 to vector<8x32xf32>
    %123 = arith.addf %122, %121 : vector<8x32xf32>
    %124 = arith.divf %122, %123 : vector<8x32xf32>
    %125 = arith.mulf %116, %65 : vector<8x32xf32>
    %126 = arith.mulf %110, %118 : vector<8x32xf32>
    %127 = arith.addf %125, %126 : vector<8x32xf32>
    %128 = math.tanh %127 : vector<8x32xf32>
    %129 = arith.mulf %124, %128 : vector<8x32xf32>
    %c2_i32 = arith.constant 2 : i32
    %130 = arith.index_cast %c2_i32 : i32 to index
    %c0_31 = arith.constant 0 : index
    %c0_32 = arith.constant 0 : index
    %131 = vector.load %arg0[%130, %c0_31, %c0_32] : memref<8x8x16xf32, #tpu.memory_space<vmem>>, vector<1x8x16xf32>
    %132 = vector.shape_cast %131 : vector<1x8x16xf32> to vector<8x16xf32>
    %cst_33 = arith.constant dense<0.000000e+00> : vector<8x32xf32>
    %133 = tpu.matmul %132, %0, %cst_33 {dimension_numbers = #tpu.dot_dimension_numbers<[1], [0], [0], [1], [0, 0, 1, 1], [], []>} : vector<8x16xf32>, vector<16x32xf32>, vector<8x32xf32> -> vector<8x32xf32>
    %134 = tpu.concatenate %133, %100 in 1 : vector<8x32xf32>, vector<8x32xf32> -> vector<8x64xf32>
    %cst_34 = arith.constant dense<0.000000e+00> : vector<8x128xf32>
    %135 = tpu.matmul %134, %1, %cst_34 {dimension_numbers = #tpu.dot_dimension_numbers<[1], [0], [0], [1], [0, 0, 1, 1], [], []>} : vector<8x64xf32>, vector<64x128xf32>, vector<8x128xf32> -> vector<8x128xf32>
    %136 = vector.broadcast %2 : vector<1x128xf32> to vector<8x128xf32>
    %137 = arith.addf %135, %136 : vector<8x128xf32>
    %138 = vector.extract_strided_slice %137 {offsets = [0, 0], sizes = [8, 32], strides = [1, 1]} : vector<8x128xf32> to vector<8x32xf32>
    %139 = arith.negf %138 : vector<8x32xf32>
    %140 = math.exp %139 : vector<8x32xf32>
    %cst_35 = arith.constant 1.000000e+00 : f32
    %141 = vector.broadcast %cst_35 : f32 to vector<8x32xf32>
    %142 = arith.addf %141, %140 : vector<8x32xf32>
    %143 = arith.divf %141, %142 : vector<8x32xf32>
    %144 = vector.extract_strided_slice %137 {offsets = [0, 32], sizes = [8, 32], strides = [1, 1]} : vector<8x128xf32> to vector<8x32xf32>
    %145 = arith.negf %144 : vector<8x32xf32>
    %146 = math.exp %145 : vector<8x32xf32>
    %cst_36 = arith.constant 1.000000e+00 : f32
    %147 = vector.broadcast %cst_36 : f32 to vector<8x32xf32>
    %148 = arith.addf %147, %146 : vector<8x32xf32>
    %149 = arith.divf %147, %148 : vector<8x32xf32>
    %150 = vector.extract_strided_slice %137 {offsets = [0, 64], sizes = [8, 32], strides = [1, 1]} : vector<8x128xf32> to vector<8x32xf32>
    %151 = math.tanh %150 : vector<8x32xf32>
    %152 = vector.extract_strided_slice %137 {offsets = [0, 96], sizes = [8, 32], strides = [1, 1]} : vector<8x128xf32> to vector<8x32xf32>
    %153 = arith.negf %152 : vector<8x32xf32>
    %154 = math.exp %153 : vector<8x32xf32>
    %cst_37 = arith.constant 1.000000e+00 : f32
    %155 = vector.broadcast %cst_37 : f32 to vector<8x32xf32>
    %156 = arith.addf %155, %154 : vector<8x32xf32>
    %157 = arith.divf %155, %156 : vector<8x32xf32>
    %158 = arith.mulf %149, %98 : vector<8x32xf32>
    %159 = arith.mulf %143, %151 : vector<8x32xf32>
    %160 = arith.addf %158, %159 : vector<8x32xf32>
    %161 = math.tanh %160 : vector<8x32xf32>
    %162 = arith.mulf %157, %161 : vector<8x32xf32>
    %163 = tpu.concatenate %162, %129 in 1 : vector<8x32xf32>, vector<8x32xf32> -> vector<8x64xf32>
    %cst_38 = arith.constant dense<0.000000e+00> : vector<8x128xf32>
    %164 = tpu.matmul %163, %3, %cst_38 {dimension_numbers = #tpu.dot_dimension_numbers<[1], [0], [0], [1], [0, 0, 1, 1], [], []>} : vector<8x64xf32>, vector<64x128xf32>, vector<8x128xf32> -> vector<8x128xf32>
    %165 = vector.broadcast %4 : vector<1x128xf32> to vector<8x128xf32>
    %166 = arith.addf %164, %165 : vector<8x128xf32>
    %167 = vector.extract_strided_slice %166 {offsets = [0, 0], sizes = [8, 32], strides = [1, 1]} : vector<8x128xf32> to vector<8x32xf32>
    %168 = arith.negf %167 : vector<8x32xf32>
    %169 = math.exp %168 : vector<8x32xf32>
    %cst_39 = arith.constant 1.000000e+00 : f32
    %170 = vector.broadcast %cst_39 : f32 to vector<8x32xf32>
    %171 = arith.addf %170, %169 : vector<8x32xf32>
    %172 = arith.divf %170, %171 : vector<8x32xf32>
    %173 = vector.extract_strided_slice %166 {offsets = [0, 32], sizes = [8, 32], strides = [1, 1]} : vector<8x128xf32> to vector<8x32xf32>
    %174 = arith.negf %173 : vector<8x32xf32>
    %175 = math.exp %174 : vector<8x32xf32>
    %cst_40 = arith.constant 1.000000e+00 : f32
    %176 = vector.broadcast %cst_40 : f32 to vector<8x32xf32>
    %177 = arith.addf %176, %175 : vector<8x32xf32>
    %178 = arith.divf %176, %177 : vector<8x32xf32>
    %179 = vector.extract_strided_slice %166 {offsets = [0, 64], sizes = [8, 32], strides = [1, 1]} : vector<8x128xf32> to vector<8x32xf32>
    %180 = math.tanh %179 : vector<8x32xf32>
    %181 = vector.extract_strided_slice %166 {offsets = [0, 96], sizes = [8, 32], strides = [1, 1]} : vector<8x128xf32> to vector<8x32xf32>
    %182 = arith.negf %181 : vector<8x32xf32>
    %183 = math.exp %182 : vector<8x32xf32>
    %cst_41 = arith.constant 1.000000e+00 : f32
    %184 = vector.broadcast %cst_41 : f32 to vector<8x32xf32>
    %185 = arith.addf %184, %183 : vector<8x32xf32>
    %186 = arith.divf %184, %185 : vector<8x32xf32>
    %187 = arith.mulf %178, %127 : vector<8x32xf32>
    %188 = arith.mulf %172, %180 : vector<8x32xf32>
    %189 = arith.addf %187, %188 : vector<8x32xf32>
    %190 = math.tanh %189 : vector<8x32xf32>
    %191 = arith.mulf %186, %190 : vector<8x32xf32>
    %c3_i32 = arith.constant 3 : i32
    %192 = arith.index_cast %c3_i32 : i32 to index
    %c0_42 = arith.constant 0 : index
    %c0_43 = arith.constant 0 : index
    %193 = vector.load %arg0[%192, %c0_42, %c0_43] : memref<8x8x16xf32, #tpu.memory_space<vmem>>, vector<1x8x16xf32>
    %194 = vector.shape_cast %193 : vector<1x8x16xf32> to vector<8x16xf32>
    %cst_44 = arith.constant dense<0.000000e+00> : vector<8x32xf32>
    %195 = tpu.matmul %194, %0, %cst_44 {dimension_numbers = #tpu.dot_dimension_numbers<[1], [0], [0], [1], [0, 0, 1, 1], [], []>} : vector<8x16xf32>, vector<16x32xf32>, vector<8x32xf32> -> vector<8x32xf32>
    %196 = tpu.concatenate %195, %162 in 1 : vector<8x32xf32>, vector<8x32xf32> -> vector<8x64xf32>
    %cst_45 = arith.constant dense<0.000000e+00> : vector<8x128xf32>
    %197 = tpu.matmul %196, %1, %cst_45 {dimension_numbers = #tpu.dot_dimension_numbers<[1], [0], [0], [1], [0, 0, 1, 1], [], []>} : vector<8x64xf32>, vector<64x128xf32>, vector<8x128xf32> -> vector<8x128xf32>
    %198 = vector.broadcast %2 : vector<1x128xf32> to vector<8x128xf32>
    %199 = arith.addf %197, %198 : vector<8x128xf32>
    %200 = vector.extract_strided_slice %199 {offsets = [0, 0], sizes = [8, 32], strides = [1, 1]} : vector<8x128xf32> to vector<8x32xf32>
    %201 = arith.negf %200 : vector<8x32xf32>
    %202 = math.exp %201 : vector<8x32xf32>
    %cst_46 = arith.constant 1.000000e+00 : f32
    %203 = vector.broadcast %cst_46 : f32 to vector<8x32xf32>
    %204 = arith.addf %203, %202 : vector<8x32xf32>
    %205 = arith.divf %203, %204 : vector<8x32xf32>
    %206 = vector.extract_strided_slice %199 {offsets = [0, 32], sizes = [8, 32], strides = [1, 1]} : vector<8x128xf32> to vector<8x32xf32>
    %207 = arith.negf %206 : vector<8x32xf32>
    %208 = math.exp %207 : vector<8x32xf32>
    %cst_47 = arith.constant 1.000000e+00 : f32
    %209 = vector.broadcast %cst_47 : f32 to vector<8x32xf32>
    %210 = arith.addf %209, %208 : vector<8x32xf32>
    %211 = arith.divf %209, %210 : vector<8x32xf32>
    %212 = vector.extract_strided_slice %199 {offsets = [0, 64], sizes = [8, 32], strides = [1, 1]} : vector<8x128xf32> to vector<8x32xf32>
    %213 = math.tanh %212 : vector<8x32xf32>
    %214 = vector.extract_strided_slice %199 {offsets = [0, 96], sizes = [8, 32], strides = [1, 1]} : vector<8x128xf32> to vector<8x32xf32>
    %215 = arith.negf %214 : vector<8x32xf32>
    %216 = math.exp %215 : vector<8x32xf32>
    %cst_48 = arith.constant 1.000000e+00 : f32
    %217 = vector.broadcast %cst_48 : f32 to vector<8x32xf32>
    %218 = arith.addf %217, %216 : vector<8x32xf32>
    %219 = arith.divf %217, %218 : vector<8x32xf32>
    %220 = arith.mulf %211, %160 : vector<8x32xf32>
    %221 = arith.mulf %205, %213 : vector<8x32xf32>
    %222 = arith.addf %220, %221 : vector<8x32xf32>
    %223 = math.tanh %222 : vector<8x32xf32>
    %224 = arith.mulf %219, %223 : vector<8x32xf32>
    %225 = tpu.concatenate %224, %191 in 1 : vector<8x32xf32>, vector<8x32xf32> -> vector<8x64xf32>
    %cst_49 = arith.constant dense<0.000000e+00> : vector<8x128xf32>
    %226 = tpu.matmul %225, %3, %cst_49 {dimension_numbers = #tpu.dot_dimension_numbers<[1], [0], [0], [1], [0, 0, 1, 1], [], []>} : vector<8x64xf32>, vector<64x128xf32>, vector<8x128xf32> -> vector<8x128xf32>
    %227 = vector.broadcast %4 : vector<1x128xf32> to vector<8x128xf32>
    %228 = arith.addf %226, %227 : vector<8x128xf32>
    %229 = vector.extract_strided_slice %228 {offsets = [0, 0], sizes = [8, 32], strides = [1, 1]} : vector<8x128xf32> to vector<8x32xf32>
    %230 = arith.negf %229 : vector<8x32xf32>
    %231 = math.exp %230 : vector<8x32xf32>
    %cst_50 = arith.constant 1.000000e+00 : f32
    %232 = vector.broadcast %cst_50 : f32 to vector<8x32xf32>
    %233 = arith.addf %232, %231 : vector<8x32xf32>
    %234 = arith.divf %232, %233 : vector<8x32xf32>
    %235 = vector.extract_strided_slice %228 {offsets = [0, 32], sizes = [8, 32], strides = [1, 1]} : vector<8x128xf32> to vector<8x32xf32>
    %236 = arith.negf %235 : vector<8x32xf32>
    %237 = math.exp %236 : vector<8x32xf32>
    %cst_51 = arith.constant 1.000000e+00 : f32
    %238 = vector.broadcast %cst_51 : f32 to vector<8x32xf32>
    %239 = arith.addf %238, %237 : vector<8x32xf32>
    %240 = arith.divf %238, %239 : vector<8x32xf32>
    %241 = vector.extract_strided_slice %228 {offsets = [0, 64], sizes = [8, 32], strides = [1, 1]} : vector<8x128xf32> to vector<8x32xf32>
    %242 = math.tanh %241 : vector<8x32xf32>
    %243 = vector.extract_strided_slice %228 {offsets = [0, 96], sizes = [8, 32], strides = [1, 1]} : vector<8x128xf32> to vector<8x32xf32>
    %244 = arith.negf %243 : vector<8x32xf32>
    %245 = math.exp %244 : vector<8x32xf32>
    %cst_52 = arith.constant 1.000000e+00 : f32
    %246 = vector.broadcast %cst_52 : f32 to vector<8x32xf32>
    %247 = arith.addf %246, %245 : vector<8x32xf32>
    %248 = arith.divf %246, %247 : vector<8x32xf32>
    %249 = arith.mulf %240, %189 : vector<8x32xf32>
    %250 = arith.mulf %234, %242 : vector<8x32xf32>
    %251 = arith.addf %249, %250 : vector<8x32xf32>
    %252 = math.tanh %251 : vector<8x32xf32>
    %253 = arith.mulf %248, %252 : vector<8x32xf32>
    %c4_i32 = arith.constant 4 : i32
    %254 = arith.index_cast %c4_i32 : i32 to index
    %c0_53 = arith.constant 0 : index
    %c0_54 = arith.constant 0 : index
    %255 = vector.load %arg0[%254, %c0_53, %c0_54] : memref<8x8x16xf32, #tpu.memory_space<vmem>>, vector<1x8x16xf32>
    %256 = vector.shape_cast %255 : vector<1x8x16xf32> to vector<8x16xf32>
    %cst_55 = arith.constant dense<0.000000e+00> : vector<8x32xf32>
    %257 = tpu.matmul %256, %0, %cst_55 {dimension_numbers = #tpu.dot_dimension_numbers<[1], [0], [0], [1], [0, 0, 1, 1], [], []>} : vector<8x16xf32>, vector<16x32xf32>, vector<8x32xf32> -> vector<8x32xf32>
    %258 = tpu.concatenate %257, %224 in 1 : vector<8x32xf32>, vector<8x32xf32> -> vector<8x64xf32>
    %cst_56 = arith.constant dense<0.000000e+00> : vector<8x128xf32>
    %259 = tpu.matmul %258, %1, %cst_56 {dimension_numbers = #tpu.dot_dimension_numbers<[1], [0], [0], [1], [0, 0, 1, 1], [], []>} : vector<8x64xf32>, vector<64x128xf32>, vector<8x128xf32> -> vector<8x128xf32>
    %260 = vector.broadcast %2 : vector<1x128xf32> to vector<8x128xf32>
    %261 = arith.addf %259, %260 : vector<8x128xf32>
    %262 = vector.extract_strided_slice %261 {offsets = [0, 0], sizes = [8, 32], strides = [1, 1]} : vector<8x128xf32> to vector<8x32xf32>
    %263 = arith.negf %262 : vector<8x32xf32>
    %264 = math.exp %263 : vector<8x32xf32>
    %cst_57 = arith.constant 1.000000e+00 : f32
    %265 = vector.broadcast %cst_57 : f32 to vector<8x32xf32>
    %266 = arith.addf %265, %264 : vector<8x32xf32>
    %267 = arith.divf %265, %266 : vector<8x32xf32>
    %268 = vector.extract_strided_slice %261 {offsets = [0, 32], sizes = [8, 32], strides = [1, 1]} : vector<8x128xf32> to vector<8x32xf32>
    %269 = arith.negf %268 : vector<8x32xf32>
    %270 = math.exp %269 : vector<8x32xf32>
    %cst_58 = arith.constant 1.000000e+00 : f32
    %271 = vector.broadcast %cst_58 : f32 to vector<8x32xf32>
    %272 = arith.addf %271, %270 : vector<8x32xf32>
    %273 = arith.divf %271, %272 : vector<8x32xf32>
    %274 = vector.extract_strided_slice %261 {offsets = [0, 64], sizes = [8, 32], strides = [1, 1]} : vector<8x128xf32> to vector<8x32xf32>
    %275 = math.tanh %274 : vector<8x32xf32>
    %276 = vector.extract_strided_slice %261 {offsets = [0, 96], sizes = [8, 32], strides = [1, 1]} : vector<8x128xf32> to vector<8x32xf32>
    %277 = arith.negf %276 : vector<8x32xf32>
    %278 = math.exp %277 : vector<8x32xf32>
    %cst_59 = arith.constant 1.000000e+00 : f32
    %279 = vector.broadcast %cst_59 : f32 to vector<8x32xf32>
    %280 = arith.addf %279, %278 : vector<8x32xf32>
    %281 = arith.divf %279, %280 : vector<8x32xf32>
    %282 = arith.mulf %273, %222 : vector<8x32xf32>
    %283 = arith.mulf %267, %275 : vector<8x32xf32>
    %284 = arith.addf %282, %283 : vector<8x32xf32>
    %285 = math.tanh %284 : vector<8x32xf32>
    %286 = arith.mulf %281, %285 : vector<8x32xf32>
    %287 = tpu.concatenate %286, %253 in 1 : vector<8x32xf32>, vector<8x32xf32> -> vector<8x64xf32>
    %cst_60 = arith.constant dense<0.000000e+00> : vector<8x128xf32>
    %288 = tpu.matmul %287, %3, %cst_60 {dimension_numbers = #tpu.dot_dimension_numbers<[1], [0], [0], [1], [0, 0, 1, 1], [], []>} : vector<8x64xf32>, vector<64x128xf32>, vector<8x128xf32> -> vector<8x128xf32>
    %289 = vector.broadcast %4 : vector<1x128xf32> to vector<8x128xf32>
    %290 = arith.addf %288, %289 : vector<8x128xf32>
    %291 = vector.extract_strided_slice %290 {offsets = [0, 0], sizes = [8, 32], strides = [1, 1]} : vector<8x128xf32> to vector<8x32xf32>
    %292 = arith.negf %291 : vector<8x32xf32>
    %293 = math.exp %292 : vector<8x32xf32>
    %cst_61 = arith.constant 1.000000e+00 : f32
    %294 = vector.broadcast %cst_61 : f32 to vector<8x32xf32>
    %295 = arith.addf %294, %293 : vector<8x32xf32>
    %296 = arith.divf %294, %295 : vector<8x32xf32>
    %297 = vector.extract_strided_slice %290 {offsets = [0, 32], sizes = [8, 32], strides = [1, 1]} : vector<8x128xf32> to vector<8x32xf32>
    %298 = arith.negf %297 : vector<8x32xf32>
    %299 = math.exp %298 : vector<8x32xf32>
    %cst_62 = arith.constant 1.000000e+00 : f32
    %300 = vector.broadcast %cst_62 : f32 to vector<8x32xf32>
    %301 = arith.addf %300, %299 : vector<8x32xf32>
    %302 = arith.divf %300, %301 : vector<8x32xf32>
    %303 = vector.extract_strided_slice %290 {offsets = [0, 64], sizes = [8, 32], strides = [1, 1]} : vector<8x128xf32> to vector<8x32xf32>
    %304 = math.tanh %303 : vector<8x32xf32>
    %305 = vector.extract_strided_slice %290 {offsets = [0, 96], sizes = [8, 32], strides = [1, 1]} : vector<8x128xf32> to vector<8x32xf32>
    %306 = arith.negf %305 : vector<8x32xf32>
    %307 = math.exp %306 : vector<8x32xf32>
    %cst_63 = arith.constant 1.000000e+00 : f32
    %308 = vector.broadcast %cst_63 : f32 to vector<8x32xf32>
    %309 = arith.addf %308, %307 : vector<8x32xf32>
    %310 = arith.divf %308, %309 : vector<8x32xf32>
    %311 = arith.mulf %302, %251 : vector<8x32xf32>
    %312 = arith.mulf %296, %304 : vector<8x32xf32>
    %313 = arith.addf %311, %312 : vector<8x32xf32>
    %314 = math.tanh %313 : vector<8x32xf32>
    %315 = arith.mulf %310, %314 : vector<8x32xf32>
    %c5_i32 = arith.constant 5 : i32
    %316 = arith.index_cast %c5_i32 : i32 to index
    %c0_64 = arith.constant 0 : index
    %c0_65 = arith.constant 0 : index
    %317 = vector.load %arg0[%316, %c0_64, %c0_65] : memref<8x8x16xf32, #tpu.memory_space<vmem>>, vector<1x8x16xf32>
    %318 = vector.shape_cast %317 : vector<1x8x16xf32> to vector<8x16xf32>
    %cst_66 = arith.constant dense<0.000000e+00> : vector<8x32xf32>
    %319 = tpu.matmul %318, %0, %cst_66 {dimension_numbers = #tpu.dot_dimension_numbers<[1], [0], [0], [1], [0, 0, 1, 1], [], []>} : vector<8x16xf32>, vector<16x32xf32>, vector<8x32xf32> -> vector<8x32xf32>
    %320 = tpu.concatenate %319, %286 in 1 : vector<8x32xf32>, vector<8x32xf32> -> vector<8x64xf32>
    %cst_67 = arith.constant dense<0.000000e+00> : vector<8x128xf32>
    %321 = tpu.matmul %320, %1, %cst_67 {dimension_numbers = #tpu.dot_dimension_numbers<[1], [0], [0], [1], [0, 0, 1, 1], [], []>} : vector<8x64xf32>, vector<64x128xf32>, vector<8x128xf32> -> vector<8x128xf32>
    %322 = vector.broadcast %2 : vector<1x128xf32> to vector<8x128xf32>
    %323 = arith.addf %321, %322 : vector<8x128xf32>
    %324 = vector.extract_strided_slice %323 {offsets = [0, 0], sizes = [8, 32], strides = [1, 1]} : vector<8x128xf32> to vector<8x32xf32>
    %325 = arith.negf %324 : vector<8x32xf32>
    %326 = math.exp %325 : vector<8x32xf32>
    %cst_68 = arith.constant 1.000000e+00 : f32
    %327 = vector.broadcast %cst_68 : f32 to vector<8x32xf32>
    %328 = arith.addf %327, %326 : vector<8x32xf32>
    %329 = arith.divf %327, %328 : vector<8x32xf32>
    %330 = vector.extract_strided_slice %323 {offsets = [0, 32], sizes = [8, 32], strides = [1, 1]} : vector<8x128xf32> to vector<8x32xf32>
    %331 = arith.negf %330 : vector<8x32xf32>
    %332 = math.exp %331 : vector<8x32xf32>
    %cst_69 = arith.constant 1.000000e+00 : f32
    %333 = vector.broadcast %cst_69 : f32 to vector<8x32xf32>
    %334 = arith.addf %333, %332 : vector<8x32xf32>
    %335 = arith.divf %333, %334 : vector<8x32xf32>
    %336 = vector.extract_strided_slice %323 {offsets = [0, 64], sizes = [8, 32], strides = [1, 1]} : vector<8x128xf32> to vector<8x32xf32>
    %337 = math.tanh %336 : vector<8x32xf32>
    %338 = vector.extract_strided_slice %323 {offsets = [0, 96], sizes = [8, 32], strides = [1, 1]} : vector<8x128xf32> to vector<8x32xf32>
    %339 = arith.negf %338 : vector<8x32xf32>
    %340 = math.exp %339 : vector<8x32xf32>
    %cst_70 = arith.constant 1.000000e+00 : f32
    %341 = vector.broadcast %cst_70 : f32 to vector<8x32xf32>
    %342 = arith.addf %341, %340 : vector<8x32xf32>
    %343 = arith.divf %341, %342 : vector<8x32xf32>
    %344 = arith.mulf %335, %284 : vector<8x32xf32>
    %345 = arith.mulf %329, %337 : vector<8x32xf32>
    %346 = arith.addf %344, %345 : vector<8x32xf32>
    %347 = math.tanh %346 : vector<8x32xf32>
    %348 = arith.mulf %343, %347 : vector<8x32xf32>
    %349 = tpu.concatenate %348, %315 in 1 : vector<8x32xf32>, vector<8x32xf32> -> vector<8x64xf32>
    %cst_71 = arith.constant dense<0.000000e+00> : vector<8x128xf32>
    %350 = tpu.matmul %349, %3, %cst_71 {dimension_numbers = #tpu.dot_dimension_numbers<[1], [0], [0], [1], [0, 0, 1, 1], [], []>} : vector<8x64xf32>, vector<64x128xf32>, vector<8x128xf32> -> vector<8x128xf32>
    %351 = vector.broadcast %4 : vector<1x128xf32> to vector<8x128xf32>
    %352 = arith.addf %350, %351 : vector<8x128xf32>
    %353 = vector.extract_strided_slice %352 {offsets = [0, 0], sizes = [8, 32], strides = [1, 1]} : vector<8x128xf32> to vector<8x32xf32>
    %354 = arith.negf %353 : vector<8x32xf32>
    %355 = math.exp %354 : vector<8x32xf32>
    %cst_72 = arith.constant 1.000000e+00 : f32
    %356 = vector.broadcast %cst_72 : f32 to vector<8x32xf32>
    %357 = arith.addf %356, %355 : vector<8x32xf32>
    %358 = arith.divf %356, %357 : vector<8x32xf32>
    %359 = vector.extract_strided_slice %352 {offsets = [0, 32], sizes = [8, 32], strides = [1, 1]} : vector<8x128xf32> to vector<8x32xf32>
    %360 = arith.negf %359 : vector<8x32xf32>
    %361 = math.exp %360 : vector<8x32xf32>
    %cst_73 = arith.constant 1.000000e+00 : f32
    %362 = vector.broadcast %cst_73 : f32 to vector<8x32xf32>
    %363 = arith.addf %362, %361 : vector<8x32xf32>
    %364 = arith.divf %362, %363 : vector<8x32xf32>
    %365 = vector.extract_strided_slice %352 {offsets = [0, 64], sizes = [8, 32], strides = [1, 1]} : vector<8x128xf32> to vector<8x32xf32>
    %366 = math.tanh %365 : vector<8x32xf32>
    %367 = vector.extract_strided_slice %352 {offsets = [0, 96], sizes = [8, 32], strides = [1, 1]} : vector<8x128xf32> to vector<8x32xf32>
    %368 = arith.negf %367 : vector<8x32xf32>
    %369 = math.exp %368 : vector<8x32xf32>
    %cst_74 = arith.constant 1.000000e+00 : f32
    %370 = vector.broadcast %cst_74 : f32 to vector<8x32xf32>
    %371 = arith.addf %370, %369 : vector<8x32xf32>
    %372 = arith.divf %370, %371 : vector<8x32xf32>
    %373 = arith.mulf %364, %313 : vector<8x32xf32>
    %374 = arith.mulf %358, %366 : vector<8x32xf32>
    %375 = arith.addf %373, %374 : vector<8x32xf32>
    %376 = math.tanh %375 : vector<8x32xf32>
    %377 = arith.mulf %372, %376 : vector<8x32xf32>
    %c6_i32 = arith.constant 6 : i32
    %378 = arith.index_cast %c6_i32 : i32 to index
    %c0_75 = arith.constant 0 : index
    %c0_76 = arith.constant 0 : index
    %379 = vector.load %arg0[%378, %c0_75, %c0_76] : memref<8x8x16xf32, #tpu.memory_space<vmem>>, vector<1x8x16xf32>
    %380 = vector.shape_cast %379 : vector<1x8x16xf32> to vector<8x16xf32>
    %cst_77 = arith.constant dense<0.000000e+00> : vector<8x32xf32>
    %381 = tpu.matmul %380, %0, %cst_77 {dimension_numbers = #tpu.dot_dimension_numbers<[1], [0], [0], [1], [0, 0, 1, 1], [], []>} : vector<8x16xf32>, vector<16x32xf32>, vector<8x32xf32> -> vector<8x32xf32>
    %382 = tpu.concatenate %381, %348 in 1 : vector<8x32xf32>, vector<8x32xf32> -> vector<8x64xf32>
    %cst_78 = arith.constant dense<0.000000e+00> : vector<8x128xf32>
    %383 = tpu.matmul %382, %1, %cst_78 {dimension_numbers = #tpu.dot_dimension_numbers<[1], [0], [0], [1], [0, 0, 1, 1], [], []>} : vector<8x64xf32>, vector<64x128xf32>, vector<8x128xf32> -> vector<8x128xf32>
    %384 = vector.broadcast %2 : vector<1x128xf32> to vector<8x128xf32>
    %385 = arith.addf %383, %384 : vector<8x128xf32>
    %386 = vector.extract_strided_slice %385 {offsets = [0, 0], sizes = [8, 32], strides = [1, 1]} : vector<8x128xf32> to vector<8x32xf32>
    %387 = arith.negf %386 : vector<8x32xf32>
    %388 = math.exp %387 : vector<8x32xf32>
    %cst_79 = arith.constant 1.000000e+00 : f32
    %389 = vector.broadcast %cst_79 : f32 to vector<8x32xf32>
    %390 = arith.addf %389, %388 : vector<8x32xf32>
    %391 = arith.divf %389, %390 : vector<8x32xf32>
    %392 = vector.extract_strided_slice %385 {offsets = [0, 32], sizes = [8, 32], strides = [1, 1]} : vector<8x128xf32> to vector<8x32xf32>
    %393 = arith.negf %392 : vector<8x32xf32>
    %394 = math.exp %393 : vector<8x32xf32>
    %cst_80 = arith.constant 1.000000e+00 : f32
    %395 = vector.broadcast %cst_80 : f32 to vector<8x32xf32>
    %396 = arith.addf %395, %394 : vector<8x32xf32>
    %397 = arith.divf %395, %396 : vector<8x32xf32>
    %398 = vector.extract_strided_slice %385 {offsets = [0, 64], sizes = [8, 32], strides = [1, 1]} : vector<8x128xf32> to vector<8x32xf32>
    %399 = math.tanh %398 : vector<8x32xf32>
    %400 = vector.extract_strided_slice %385 {offsets = [0, 96], sizes = [8, 32], strides = [1, 1]} : vector<8x128xf32> to vector<8x32xf32>
    %401 = arith.negf %400 : vector<8x32xf32>
    %402 = math.exp %401 : vector<8x32xf32>
    %cst_81 = arith.constant 1.000000e+00 : f32
    %403 = vector.broadcast %cst_81 : f32 to vector<8x32xf32>
    %404 = arith.addf %403, %402 : vector<8x32xf32>
    %405 = arith.divf %403, %404 : vector<8x32xf32>
    %406 = arith.mulf %397, %346 : vector<8x32xf32>
    %407 = arith.mulf %391, %399 : vector<8x32xf32>
    %408 = arith.addf %406, %407 : vector<8x32xf32>
    %409 = math.tanh %408 : vector<8x32xf32>
    %410 = arith.mulf %405, %409 : vector<8x32xf32>
    %411 = tpu.concatenate %410, %377 in 1 : vector<8x32xf32>, vector<8x32xf32> -> vector<8x64xf32>
    %cst_82 = arith.constant dense<0.000000e+00> : vector<8x128xf32>
    %412 = tpu.matmul %411, %3, %cst_82 {dimension_numbers = #tpu.dot_dimension_numbers<[1], [0], [0], [1], [0, 0, 1, 1], [], []>} : vector<8x64xf32>, vector<64x128xf32>, vector<8x128xf32> -> vector<8x128xf32>
    %413 = vector.broadcast %4 : vector<1x128xf32> to vector<8x128xf32>
    %414 = arith.addf %412, %413 : vector<8x128xf32>
    %415 = vector.extract_strided_slice %414 {offsets = [0, 0], sizes = [8, 32], strides = [1, 1]} : vector<8x128xf32> to vector<8x32xf32>
    %416 = arith.negf %415 : vector<8x32xf32>
    %417 = math.exp %416 : vector<8x32xf32>
    %cst_83 = arith.constant 1.000000e+00 : f32
    %418 = vector.broadcast %cst_83 : f32 to vector<8x32xf32>
    %419 = arith.addf %418, %417 : vector<8x32xf32>
    %420 = arith.divf %418, %419 : vector<8x32xf32>
    %421 = vector.extract_strided_slice %414 {offsets = [0, 32], sizes = [8, 32], strides = [1, 1]} : vector<8x128xf32> to vector<8x32xf32>
    %422 = arith.negf %421 : vector<8x32xf32>
    %423 = math.exp %422 : vector<8x32xf32>
    %cst_84 = arith.constant 1.000000e+00 : f32
    %424 = vector.broadcast %cst_84 : f32 to vector<8x32xf32>
    %425 = arith.addf %424, %423 : vector<8x32xf32>
    %426 = arith.divf %424, %425 : vector<8x32xf32>
    %427 = vector.extract_strided_slice %414 {offsets = [0, 64], sizes = [8, 32], strides = [1, 1]} : vector<8x128xf32> to vector<8x32xf32>
    %428 = math.tanh %427 : vector<8x32xf32>
    %429 = vector.extract_strided_slice %414 {offsets = [0, 96], sizes = [8, 32], strides = [1, 1]} : vector<8x128xf32> to vector<8x32xf32>
    %430 = arith.negf %429 : vector<8x32xf32>
    %431 = math.exp %430 : vector<8x32xf32>
    %cst_85 = arith.constant 1.000000e+00 : f32
    %432 = vector.broadcast %cst_85 : f32 to vector<8x32xf32>
    %433 = arith.addf %432, %431 : vector<8x32xf32>
    %434 = arith.divf %432, %433 : vector<8x32xf32>
    %435 = arith.mulf %426, %375 : vector<8x32xf32>
    %436 = arith.mulf %420, %428 : vector<8x32xf32>
    %437 = arith.addf %435, %436 : vector<8x32xf32>
    %438 = math.tanh %437 : vector<8x32xf32>
    %439 = arith.mulf %434, %438 : vector<8x32xf32>
    %c7_i32 = arith.constant 7 : i32
    %440 = arith.index_cast %c7_i32 : i32 to index
    %c0_86 = arith.constant 0 : index
    %c0_87 = arith.constant 0 : index
    %441 = vector.load %arg0[%440, %c0_86, %c0_87] : memref<8x8x16xf32, #tpu.memory_space<vmem>>, vector<1x8x16xf32>
    %442 = vector.shape_cast %441 : vector<1x8x16xf32> to vector<8x16xf32>
    %cst_88 = arith.constant dense<0.000000e+00> : vector<8x32xf32>
    %443 = tpu.matmul %442, %0, %cst_88 {dimension_numbers = #tpu.dot_dimension_numbers<[1], [0], [0], [1], [0, 0, 1, 1], [], []>} : vector<8x16xf32>, vector<16x32xf32>, vector<8x32xf32> -> vector<8x32xf32>
    %444 = tpu.concatenate %443, %410 in 1 : vector<8x32xf32>, vector<8x32xf32> -> vector<8x64xf32>
    %cst_89 = arith.constant dense<0.000000e+00> : vector<8x128xf32>
    %445 = tpu.matmul %444, %1, %cst_89 {dimension_numbers = #tpu.dot_dimension_numbers<[1], [0], [0], [1], [0, 0, 1, 1], [], []>} : vector<8x64xf32>, vector<64x128xf32>, vector<8x128xf32> -> vector<8x128xf32>
    %446 = vector.broadcast %2 : vector<1x128xf32> to vector<8x128xf32>
    %447 = arith.addf %445, %446 : vector<8x128xf32>
    %448 = vector.extract_strided_slice %447 {offsets = [0, 0], sizes = [8, 32], strides = [1, 1]} : vector<8x128xf32> to vector<8x32xf32>
    %449 = arith.negf %448 : vector<8x32xf32>
    %450 = math.exp %449 : vector<8x32xf32>
    %cst_90 = arith.constant 1.000000e+00 : f32
    %451 = vector.broadcast %cst_90 : f32 to vector<8x32xf32>
    %452 = arith.addf %451, %450 : vector<8x32xf32>
    %453 = arith.divf %451, %452 : vector<8x32xf32>
    %454 = vector.extract_strided_slice %447 {offsets = [0, 32], sizes = [8, 32], strides = [1, 1]} : vector<8x128xf32> to vector<8x32xf32>
    %455 = arith.negf %454 : vector<8x32xf32>
    %456 = math.exp %455 : vector<8x32xf32>
    %cst_91 = arith.constant 1.000000e+00 : f32
    %457 = vector.broadcast %cst_91 : f32 to vector<8x32xf32>
    %458 = arith.addf %457, %456 : vector<8x32xf32>
    %459 = arith.divf %457, %458 : vector<8x32xf32>
    %460 = vector.extract_strided_slice %447 {offsets = [0, 64], sizes = [8, 32], strides = [1, 1]} : vector<8x128xf32> to vector<8x32xf32>
    %461 = math.tanh %460 : vector<8x32xf32>
    %462 = vector.extract_strided_slice %447 {offsets = [0, 96], sizes = [8, 32], strides = [1, 1]} : vector<8x128xf32> to vector<8x32xf32>
    %463 = arith.negf %462 : vector<8x32xf32>
    %464 = math.exp %463 : vector<8x32xf32>
    %cst_92 = arith.constant 1.000000e+00 : f32
    %465 = vector.broadcast %cst_92 : f32 to vector<8x32xf32>
    %466 = arith.addf %465, %464 : vector<8x32xf32>
    %467 = arith.divf %465, %466 : vector<8x32xf32>
    %468 = arith.mulf %459, %408 : vector<8x32xf32>
    %469 = arith.mulf %453, %461 : vector<8x32xf32>
    %470 = arith.addf %468, %469 : vector<8x32xf32>
    %471 = math.tanh %470 : vector<8x32xf32>
    %472 = arith.mulf %467, %471 : vector<8x32xf32>
    %473 = tpu.concatenate %472, %439 in 1 : vector<8x32xf32>, vector<8x32xf32> -> vector<8x64xf32>
    %cst_93 = arith.constant dense<0.000000e+00> : vector<8x128xf32>
    %474 = tpu.matmul %473, %3, %cst_93 {dimension_numbers = #tpu.dot_dimension_numbers<[1], [0], [0], [1], [0, 0, 1, 1], [], []>} : vector<8x64xf32>, vector<64x128xf32>, vector<8x128xf32> -> vector<8x128xf32>
    %475 = vector.broadcast %4 : vector<1x128xf32> to vector<8x128xf32>
    %476 = arith.addf %474, %475 : vector<8x128xf32>
    %477 = vector.extract_strided_slice %476 {offsets = [0, 0], sizes = [8, 32], strides = [1, 1]} : vector<8x128xf32> to vector<8x32xf32>
    %478 = arith.negf %477 : vector<8x32xf32>
    %479 = math.exp %478 : vector<8x32xf32>
    %cst_94 = arith.constant 1.000000e+00 : f32
    %480 = vector.broadcast %cst_94 : f32 to vector<8x32xf32>
    %481 = arith.addf %480, %479 : vector<8x32xf32>
    %482 = arith.divf %480, %481 : vector<8x32xf32>
    %483 = vector.extract_strided_slice %476 {offsets = [0, 32], sizes = [8, 32], strides = [1, 1]} : vector<8x128xf32> to vector<8x32xf32>
    %484 = arith.negf %483 : vector<8x32xf32>
    %485 = math.exp %484 : vector<8x32xf32>
    %cst_95 = arith.constant 1.000000e+00 : f32
    %486 = vector.broadcast %cst_95 : f32 to vector<8x32xf32>
    %487 = arith.addf %486, %485 : vector<8x32xf32>
    %488 = arith.divf %486, %487 : vector<8x32xf32>
    %489 = vector.extract_strided_slice %476 {offsets = [0, 64], sizes = [8, 32], strides = [1, 1]} : vector<8x128xf32> to vector<8x32xf32>
    %490 = math.tanh %489 : vector<8x32xf32>
    %491 = vector.extract_strided_slice %476 {offsets = [0, 96], sizes = [8, 32], strides = [1, 1]} : vector<8x128xf32> to vector<8x32xf32>
    %492 = arith.negf %491 : vector<8x32xf32>
    %493 = math.exp %492 : vector<8x32xf32>
    %cst_96 = arith.constant 1.000000e+00 : f32
    %494 = vector.broadcast %cst_96 : f32 to vector<8x32xf32>
    %495 = arith.addf %494, %493 : vector<8x32xf32>
    %496 = arith.divf %494, %495 : vector<8x32xf32>
    %497 = arith.mulf %488, %437 : vector<8x32xf32>
    %498 = arith.mulf %482, %490 : vector<8x32xf32>
    %499 = arith.addf %497, %498 : vector<8x32xf32>
    %500 = math.tanh %499 : vector<8x32xf32>
    %501 = arith.mulf %496, %500 : vector<8x32xf32>
    %c8_i32 = arith.constant 8 : i32
    %502 = tpu.concatenate %472, %501, %470, %499 in 1 : vector<8x32xf32>, vector<8x32xf32>, vector<8x32xf32>, vector<8x32xf32> -> vector<8x128xf32>
    %c0_97 = arith.constant 0 : index
    %c0_98 = arith.constant 0 : index
    %503 = vector.load %arg6[%c0_97, %c0_98] : memref<8x128xf32, #tpu.memory_space<vmem>>, vector<8x128xf32>
    tpu.vector_store %arg6[%c0_97, %c0_98], %502 {strides = array<i32>} : memref<8x128xf32, #tpu.memory_space<vmem>>, vector<8x128xf32>,
    return
  }
}

</mosaic_0001>

<bundles_post_ra>
// kernel: encoder_forward.1
= control target key start
LH: loop header
LB: loop body
LE: loop exit
PB: predicated region body
PF: predicated region fallthrough
CT: control target
= control target key end

     0   :  { %11 = vsyncpa [#allocation3], 0  ;;  %s1558_s24 = smov [#allocation2]   ;;  %s1559_s26 = smov 128   ;;  %s2045_s0 = inlined_call_operand.vmem [shape: f32[8,8,16], index: 0, kind: input, shape index: {}]   ;;  %s2046_s1 = inlined_call_operand.vmem [shape: f32[16,32], index: 1, kind: input, shape index: {}]   ;;  %s2047_s2 = inlined_call_operand.vmem [shape: f32[64,128], index: 2, kind: input, shape index: {}]   ;;  %s2048_s3 = inlined_call_operand.vmem [shape: f32[1,128], index: 3, kind: input, shape index: {}]   ;;  %s2049_s4 = inlined_call_operand.hbm [shape: f32[64,128], index: 4, kind: input, shape index: {}]   ;;  %s2050_s5 = inlined_call_operand.vmem [shape: f32[1,128], index: 5, kind: input, shape index: {}]   ;;  %s2051_s6 = inlined_call_operand.vmem [shape: f32[8,128], index: 6, kind: output, shape index: {}]  }
   0x1   :  { %s24_s23 = sshll.u32 %s2049_s4, 4  ;;  %s26_s25 = sshll.u32 %s1558_s24, 4  ;;  %s25_s23 = int_to_ptr.hbm [resolvable:$true] %s24_s23  ;;  %s27_s25 = int_to_ptr.vmem [resolvable:$true] %s26_s25 }
   0x2   :  { %s1560_s27 = smov 8  }
   0x3   :  { %32 = dma.hbm_to_vmem [thread:$0]  %s25_s23, 1024, %s27_s25, [#allocation3], %s1559_s26, %s1559_s26, %s1560_s27  }
   0x4   :  { %1556 = dma.done.wait [#allocation3], 1024  }
   0x5   :  { %1557 = vsyncadd [#allocation3], 4294966272  ;;  %v1604_v0 = vld [vmem:[%s2046_s1 + $0x8] sm:$0xff]  ;;  %v1609_v1 = vld [vmem:[%s2046_s1] sm:$0xff]  ;;  %vm60_vm0 = vcmask 130048   ;;  %vm84_vm1 = vcmask 261120  }
   0x6   :  { %78 = vmatpush.msra.mxu0 %v1604_v0  ;;  %v59_v2 = vld [vmem:[%s2045_s0] sm:$0xff]  ;;  %v1618_v3 = vld [vmem:[%s2047_s2 + $0x38] sm:$0xff]  ;;  %v1623_v4 = vld [vmem:[%s2047_s2 + $0x30] sm:$0xff]  ;;  %vm89_vm2 = vcmask 523264   ;;  %s1561_s26 = smov 64   ;;  %s1562_s27 = smov 32  }
   0x7   :  { %101 = vmatpush.msra.mxu1 %v1618_v3  ;;  %v1630_v5 = vld [vmem:[%s2047_s2 + $0x28] sm:$0xff]  ;;  %v1637_v6 = vld [vmem:[%s2047_s2 + $0x20] sm:$0xff]  ;;  %v1644_v7 = vld [vmem:[%s2047_s2 + $0x18] sm:$0xff] }
   0x8   :  { %79 = vmatpush.msra.mxu0 %v1609_v1  ;;  %v1651_v8 = vld [vmem:[%s2047_s2 + $0x10] sm:$0xff]  ;;  %v1658_v9 = vld [vmem:[%s2047_s2 + $0x8] sm:$0xff]  ;;  %v1669_v10 = vld [vmem:[%s2047_s2] sm:$0xff] }
   0x9   :  { %1346 = vmatmul.msk.f32.vlgmr.msra.gmra.mxu0 %vm60_vm0, %v59_v2  ;;  %102 = vmatpush.msra.mxu1 %v1623_v4  ;;  %v1682_v13 = vld [vmem:[%s2048_s3] ss:$0 sm:$0xff]  ;;  %v1351_v32 = vld [vmem:[%s2045_s0 + $0x8] sm:$0xff]  ;;  %v1705_v39 = vld [vmem:[#allocation2 + $0x38] sm:$0xff] }
   0xa   :  { %258 = vmatpush.msrb.mxu0 %v1618_v3  ;;  %v1707_v40 = vld [vmem:[#allocation2 + $0x30] sm:$0xff]  ;;  %169 = vmatpush.msra.mxu2 %v1705_v39  ;;  %v1711_v41 = vld [vmem:[#allocation2 + $0x28] sm:$0xff]  ;;  %v1716_v42 = vld [vmem:[#allocation2 + $0x20] sm:$0xff] }
   0xb   :  { %103 = vmatpush.msra.mxu1 %v1630_v5  ;;  %327 = vmatpush.msra.mxu3 %v1705_v39  ;;  %v1721_v43 = vld [vmem:[#allocation2 + $0x18] sm:$0xff]  ;;  %v1726_v44 = vld [vmem:[#allocation2 + $0x10] sm:$0xff]  ;;  %v1731_v45 = vld [vmem:[#allocation2 + $0x8] sm:$0xff] }
   0xc   :  { %259 = vmatpush.msrb.mxu0 %v1623_v4  ;;  %170 = vmatpush.msra.mxu2 %v1707_v40  ;;  %v1740_v46 = vld [vmem:[#allocation2] sm:$0xff] }
   0xd   :  { %104 = vmatpush.msra.mxu1 %v1637_v6  ;;  %328 = vmatpush.msra.mxu3 %v1707_v40  ;;  %v1774_v55 = vld [vmem:[%s2050_s5] ss:$0 sm:$0xff] }
   0xe   :  { %260 = vmatpush.msrb.mxu0 %v1630_v5  ;;  %171 = vmatpush.msra.mxu2 %v1711_v41 }
   0xf   :  { %105 = vmatpush.msra.mxu1 %v1644_v7  ;;  %329 = vmatpush.msra.mxu3 %v1711_v41 }
  0x10   :  { %261 = vmatpush.msrb.mxu0 %v1637_v6  ;;  %172 = vmatpush.msra.mxu2 %v1716_v42 }
  0x11   :  { %106 = vmatpush.msra.mxu1 %v1651_v8  ;;  %330 = vmatpush.msra.mxu3 %v1716_v42 }
  0x12   :  { %262 = vmatpush.msrb.mxu0 %v1644_v7  ;;  %173 = vmatpush.msra.mxu2 %v1721_v43 }
  0x13   :  { %107 = vmatpush.msra.mxu1 %v1658_v9  ;;  %331 = vmatpush.msra.mxu3 %v1721_v43 }
  0x14   :  { %263 = vmatpush.msrb.mxu0 %v1651_v8  ;;  %174 = vmatpush.msra.mxu2 %v1726_v44 }
  0x15   :  { %108 = vmatpush.msra.mxu1 %v1669_v10  ;;  %332 = vmatpush.msra.mxu3 %v1726_v44 }
  0x16   :  { %264 = vmatpush.msrb.mxu0 %v1658_v9  ;;  %175 = vmatpush.msra.mxu2 %v1731_v45 }
  0x17   :  { %237 = vmatpush.msrb.mxu1 %v1604_v0  ;;  %333 = vmatpush.msra.mxu3 %v1731_v45 }
  0x18   :  { %265 = vmatpush.msrb.mxu0 %v1669_v10  ;;  %176 = vmatpush.msra.mxu2 %v1740_v46 }
  0x19   :  { %238 = vmatpush.msrb.mxu1 %v1609_v1  ;;  %334 = vmatpush.msra.mxu3 %v1740_v46 }
  0x1a   :  { %485 = vmatpush.msra.mxu0 %v1705_v39  ;;  %416 = vmatpush.msrb.mxu2 %v1618_v3 }
  0x1b   :  { %553 = vmatpush.msrb.mxu3 %v1604_v0 }
  0x1c   :  { %486 = vmatpush.msra.mxu0 %v1707_v40  ;;  %417 = vmatpush.msrb.mxu2 %v1623_v4 }
  0x1d   :  { %554 = vmatpush.msrb.mxu3 %v1609_v1 }
  0x1e   :  { %487 = vmatpush.msra.mxu0 %v1711_v41  ;;  %418 = vmatpush.msrb.mxu2 %v1630_v5 }
  0x20   :  { %488 = vmatpush.msra.mxu0 %v1716_v42  ;;  %419 = vmatpush.msrb.mxu2 %v1637_v6 }
  0x22   :  { %489 = vmatpush.msra.mxu0 %v1721_v43  ;;  %420 = vmatpush.msrb.mxu2 %v1644_v7 }
  0x24   :  { %490 = vmatpush.msra.mxu0 %v1726_v44  ;;  %421 = vmatpush.msrb.mxu2 %v1651_v8 }
  0x26   :  { %491 = vmatpush.msra.mxu0 %v1731_v45  ;;  %422 = vmatpush.msrb.mxu2 %v1658_v9 }
  0x28   :  { %492 = vmatpush.msra.mxu0 %v1740_v46  ;;  %423 = vmatpush.msrb.mxu2 %v1669_v10 }
  0x86   :  { %v81_v11 = vpop.f32.mrf.mxu0 }
  0x87   :  { %v85_v12 = vsel %vm84_vm1, %v81_v11, 0.0 }
  0x88   :  { %1347 = vmatmul.msk.f32.vlgmr.msra.gmra.mxu1 %vm89_vm2, %v85_v12 }
  0x89   :  { %395 = vmatpush.msra.mxu1 %v1604_v0 }
  0x8b   :  { %396 = vmatpush.msra.mxu1 %v1609_v1 }
  0x90   :  { %1352 = vmatmul.msk.f32.vlgmr.msrb.gmra.mxu1 %vm60_vm0, %v1351_v32 }
  0x91   :  { %574 = vmatpush.msrb.mxu1 %v1618_v3 }
  0x93   :  { %575 = vmatpush.msrb.mxu1 %v1623_v4 }
  0x95   :  { %576 = vmatpush.msrb.mxu1 %v1630_v5 }
  0x97   :  { %577 = vmatpush.msrb.mxu1 %v1637_v6 }
  0x99   :  { %578 = vmatpush.msrb.mxu1 %v1644_v7 }
  0x9b   :  { %579 = vmatpush.msrb.mxu1 %v1651_v8 }
  0x9d   :  { %580 = vmatpush.msrb.mxu1 %v1658_v9 }
  0x9f   :  { %581 = vmatpush.msrb.mxu1 %v1669_v10 }
 0x105   :  { %v110_v14 = vpop.f32.mrf.mxu1 }
 0x106   :  { %v111_v15 = vadd.f32 %v1682_v13, %v110_v14 }
 0x108   :  { %1400 = vtanh.f32 %v111_v15  ;;  %v1348_v17 = vmul.f32 -1.442695, %v111_v15 }
 0x10a   :  { %1402 = vpow2.f32 %v1348_v17 }
 0x10d   :  { %v240_v47 = vpop.f32.mrf.mxu1 }
 0x10e   :  { %v1401_v16 = vpop.eup %1400 }
 0x10f   :  { %135 = vrot.lane.b32.xlu0 %v1401_v16, %s1561_s26 }
 0x110   :  { %v1403_v18 = vpop.eup %1402 }
 0x111   :  { %v116_v19 = vadd.f32 1.0, %v1403_v18 }
 0x113   :  { %1404 = vrcp.f32 %v116_v19  ;;  %v128_v25 = vand.u32 2147483648, %v116_v19  ;;  %vm122_vm4 = vweird.f32 %v116_v19  ;;  %v126_v26 = vand.u32 2147483647, %v116_v19 }
 0x115   :  { %v129_v28 = vor.u32 1.1754944e-38, %v128_v25  ;;  %vm127_vm6 = vcmp.eq.f32.partialorder %v126_v26, 8.507059e+37 }
 0x119   :  { %v1405_v20 = vpop.eup %1404 }
 0x11a   :  { %v118_v21 = vmul.f32 %v1405_v20, %v116_v19  ;;  %vm123_vm3 = vweird.f32 %v1405_v20 }
 0x11b   :  { %vm124_vm5 = vmor %vm122_vm4, %vm123_vm3 }
 0x11c   :  { %v119_v22 = vsub.f32 1.0, %v118_v21 }
 0x11e   :  { %v120_v23 = vmul.f32 %v1405_v20, %v119_v22 }
 0x120   :  { %v121_v24 = vadd.f32 %v1405_v20, %v120_v23 }
 0x122   :  { %v125_v27 = vsel %vm124_vm5, %v1405_v20, %v121_v24 }
 0x123   :  { %v130_v30 = vsel %vm127_vm6, %v129_v28, %v125_v27 }
 0x124   :  { %v133_v33 = vmul.f32 0.0, %v130_v30 }
 0x181   :  { %v136_v29 = vpop.permute.xlu0 %135 }
 0x182   :  { %v138_v31 = vmul.f32 %v136_v29, %v130_v30 }
 0x184   :  { %140 = vrot.lane.b32.xlu0 %v138_v31, %s1562_s27 }
 0x1f6   :  { %v141_v34 = vpop.permute.xlu0 %140 }
 0x1f7   :  { %v1699_v35 = vadd.f32 %v141_v34, %v133_v33 }
 0x1f9   :  { %1406 = vtanh.f32 %v1699_v35 }
 0x1ff   :  { %v1407_v36 = vpop.eup %1406 }
 0x200   :  { %146 = vrot.lane.b32.xlu1 %v1407_v36, %s1561_s26 }
 0x272   :  { %v147_v37 = vpop.permute.xlu1 %146 }
 0x273   :  { %v149_v38 = vmul.f32 %v147_v37, %v130_v30 }
 0x275   :  { %243 = vrot.lane.b32.xlu2 %v149_v38, %s1561_s26  ;;  %151 = vrot.lane.b32.xlu1 %v149_v38, %s1562_s27 }
 0x2cf   :  { %v244_v48 = vpop.permute.xlu2 %243 }
 0x2d0   :  { %v246_v49 = vsel %vm84_vm1, %v240_v47, %v244_v48  ;;  %v1357_v48 = vld [vmem:[%s2045_s0 + $0x10] sm:$0xff] }
 0x2d1   :  { %1353 = vmatmul.msk.f32.vlgmr.msrb.gmra.mxu0 %vm89_vm2, %v246_v49  ;;  %1358 = vmatmul.msk.f32.vlgmr.msra.gmra.mxu1 %vm60_vm0, %v1357_v48 }
 0x2d2   :  { %732 = vmatpush.msrb.mxu0 %v1618_v3  ;;  %801 = vmatpush.msra.mxu1 %v1705_v39 }
 0x2d4   :  { %733 = vmatpush.msrb.mxu0 %v1623_v4  ;;  %802 = vmatpush.msra.mxu1 %v1707_v40 }
 0x2d6   :  { %734 = vmatpush.msrb.mxu0 %v1630_v5  ;;  %803 = vmatpush.msra.mxu1 %v1711_v41 }
 0x2d8   :  { %735 = vmatpush.msrb.mxu0 %v1637_v6  ;;  %804 = vmatpush.msra.mxu1 %v1716_v42 }
 0x2da   :  { %736 = vmatpush.msrb.mxu0 %v1644_v7  ;;  %805 = vmatpush.msra.mxu1 %v1721_v43 }
 0x2dc   :  { %737 = vmatpush.msrb.mxu0 %v1651_v8  ;;  %806 = vmatpush.msra.mxu1 %v1726_v44 }
 0x2de   :  { %738 = vmatpush.msrb.mxu0 %v1658_v9  ;;  %807 = vmatpush.msra.mxu1 %v1731_v45 }
 0x2e0   :  { %739 = vmatpush.msrb.mxu0 %v1669_v10  ;;  %808 = vmatpush.msra.mxu1 %v1740_v46 }
 0x2e7   :  { %v152_v50 = vpop.permute.xlu1 %151 }
 0x2e8   :  { %v154_v51 = vsel %vm84_vm1, %v152_v50, 0.0 }
 0x2e9   :  { %1349 = vmatmul.msk.f32.vlgmr.msra.gmra.mxu2 %vm89_vm2, %v154_v51 }
 0x2ea   :  { %711 = vmatpush.msra.mxu2 %v1604_v0 }
 0x2ec   :  { %712 = vmatpush.msra.mxu2 %v1609_v1 }
 0x34e   :  { %v267_v52 = vpop.f32.mrf.mxu0 }
 0x34f   :  { %v268_v53 = vadd.f32 %v1682_v13, %v267_v52 }
 0x351   :  { %1408 = vtanh.f32 %v268_v53  ;;  %v1354_v59 = vmul.f32 -1.442695, %v268_v53 }
 0x357   :  { %v1409_v54 = vpop.eup %1408 }
 0x358   :  { %292 = vrot.lane.b32.xlu0 %v1409_v54, %s1561_s26 }
 0x36c   :  { %v178_v56 = vpop.f32.mrf.mxu2 }
 0x36d   :  { %v179_v57 = vadd.f32 %v1774_v55, %v178_v56 }
 0x36f   :  { %1410 = vtanh.f32 %v179_v57  ;;  %v1350_v60 = vmul.f32 -1.442695, %v179_v57 }
 0x370   :  { %1412 = vpow2.f32 %v1354_v59 }
 0x371   :  { %1414 = vpow2.f32 %v1350_v60 }
 0x375   :  { %v1411_v58 = vpop.eup %1410 }
 0x376   :  { %203 = vrot.lane.b32.xlu2 %v1411_v58, %s1561_s26  ;;  %v1413_v61 = vpop.eup %1412  ;;  %v398_v58 = vpop.f32.mrf.mxu1 }
 0x377   :  { %v273_v62 = vadd.f32 1.0, %v1413_v61  ;;  %v1415_v63 = vpop.eup %1414 }
 0x378   :  { %v184_v2 = vadd.f32 1.0, %v1415_v63 }
 0x379   :  { %1416 = vrcp.f32 %v273_v62  ;;  %v285_v20 = vand.u32 2147483648, %v273_v62  ;;  %vm279_vm8 = vweird.f32 %v273_v62  ;;  %v283_v21 = vand.u32 2147483647, %v273_v62 }
 0x37a   :  { %1418 = vrcp.f32 %v184_v2  ;;  %v196_v28 = vand.u32 2147483648, %v184_v2  ;;  %vm190_vm12 = vweird.f32 %v184_v2  ;;  %v194_v30 = vand.u32 2147483647, %v184_v2 }
 0x37b   :  { %v286_v24 = vor.u32 1.1754944e-38, %v285_v20  ;;  %vm284_vm10 = vcmp.eq.f32.partialorder %v283_v21, 8.507059e+37 }
 0x37c   :  { %v197_v32 = vor.u32 1.1754944e-38, %v196_v28  ;;  %vm195_vm14 = vcmp.eq.f32.partialorder %v194_v30, 8.507059e+37 }
 0x37f   :  { %v1417_v11 = vpop.eup %1416 }
 0x380   :  { %v275_v12 = vmul.f32 %v1417_v11, %v273_v62  ;;  %v1419_v14 = vpop.eup %1418  ;;  %vm280_vm7 = vweird.f32 %v1417_v11 }
 0x381   :  { %v186_v16 = vmul.f32 %v1419_v14, %v184_v2  ;;  %vm281_vm9 = vmor %vm279_vm8, %vm280_vm7  ;;  %vm191_vm11 = vweird.f32 %v1419_v14 }
 0x382   :  { %v276_v15 = vsub.f32 1.0, %v275_v12  ;;  %vm192_vm13 = vmor %vm190_vm12, %vm191_vm11 }
 0x383   :  { %v187_v18 = vsub.f32 1.0, %v186_v16 }
 0x384   :  { %v277_v17 = vmul.f32 %v1417_v11, %v276_v15 }
 0x385   :  { %v188_v22 = vmul.f32 %v1419_v14, %v187_v18 }
 0x386   :  { %v278_v19 = vadd.f32 %v1417_v11, %v277_v17 }
 0x387   :  { %v189_v25 = vadd.f32 %v1419_v14, %v188_v22 }
 0x388   :  { %v282_v23 = vsel %vm281_vm9, %v1417_v11, %v278_v19 }
 0x389   :  { %v287_v27 = vsel %vm284_vm10, %v286_v24, %v282_v23  ;;  %v193_v31 = vsel %vm192_vm13, %v1419_v14, %v189_v25 }
 0x38a   :  { %v198_v34 = vsel %vm195_vm14, %v197_v32, %v193_v31  ;;  %v290_v37 = vmul.f32 %v287_v27, %v1699_v35 }
 0x38b   :  { %v201_v35 = vmul.f32 0.0, %v198_v34 }
 0x3ca   :  { %v293_v26 = vpop.permute.xlu0 %292 }
 0x3cb   :  { %v295_v29 = vmul.f32 %v293_v26, %v287_v27 }
 0x3cd   :  { %297 = vrot.lane.b32.xlu2 %v295_v29, %s1562_s27 }
 0x3d0   :  { %v204_v33 = vpop.permute.xlu2 %203 }
 0x3d1   :  { %v206_v36 = vmul.f32 %v204_v33, %v198_v34 }
 0x3d3   :  { %208 = vrot.lane.b32.xlu1 %v206_v36, %s1562_s27 }
 0x427   :  { %v298_v38 = vpop.permute.xlu2 %297 }
 0x428   :  { %v1781_v47 = vadd.f32 %v298_v38, %v290_v37 }
 0x42a   :  { %1420 = vtanh.f32 %v1781_v47 }
 0x430   :  { %v1421_v49 = vpop.eup %1420 }
 0x431   :  { %303 = vrot.lane.b32.xlu1 %v1421_v49, %s1561_s26 }
 0x445   :  { %v209_v50 = vpop.permute.xlu1 %208 }
 0x446   :  { %v1797_v51 = vadd.f32 %v209_v50, %v201_v35 }
 0x448   :  { %1422 = vtanh.f32 %v1797_v51 }
 0x44e   :  { %v1423_v52 = vpop.eup %1422 }
 0x44f   :  { %214 = vrot.lane.b32.xlu0 %v1423_v52, %s1561_s26 }
 0x4a3   :  { %v304_v53 = vpop.permute.xlu1 %303 }
 0x4a4   :  { %v306_v54 = vmul.f32 %v304_v53, %v287_v27 }
 0x4a6   :  { %401 = vrot.lane.b32.xlu1 %v306_v54, %s1561_s26  ;;  %308 = vrot.lane.b32.xlu2 %v306_v54, %s1562_s27 }
 0x4c1   :  { %v215_v56 = vpop.permute.xlu0 %214 }
 0x4c2   :  { %v217_v57 = vmul.f32 %v215_v56, %v198_v34 }
 0x4c4   :  { %312 = vrot.lane.b32.xlu0 %v217_v57, %s1561_s26 }
 0x500   :  { %v309_v61 = vpop.permute.xlu2 %308 }
 0x518   :  { %v402_v59 = vpop.permute.xlu1 %401 }
 0x519   :  { %v404_v60 = vsel %vm84_vm1, %v398_v58, %v402_v59 }
 0x51a   :  { %1359 = vmatmul.msk.f32.vlgmr.msrb.gmra.mxu2 %vm89_vm2, %v404_v60 }
 0x51b   :  { %869 = vmatpush.msrb.mxu2 %v1604_v0 }
 0x51d   :  { %870 = vmatpush.msrb.mxu2 %v1609_v1 }
 0x536   :  { %v313_v62 = vpop.permute.xlu0 %312 }
 0x537   :  { %v315_v63 = vsel %vm84_vm1, %v309_v61, %v313_v62  ;;  %v1363_v61 = vld [vmem:[%s2045_s0 + $0x18] sm:$0xff] }
 0x538   :  { %1355 = vmatmul.msk.f32.vlgmr.msra.gmra.mxu3 %vm89_vm2, %v315_v63 }
 0x539   :  { %643 = vmatpush.msra.mxu3 %v1705_v39 }
 0x53b   :  { %644 = vmatpush.msra.mxu3 %v1707_v40 }
 0x53d   :  { %645 = vmatpush.msra.mxu3 %v1711_v41 }
 0x53f   :  { %646 = vmatpush.msra.mxu3 %v1716_v42 }
 0x540   :  { %1364 = vmatmul.msk.f32.vlgmr.msrb.gmra.mxu3 %vm60_vm0, %v1363_v61 }
 0x541   :  { %647 = vmatpush.msra.mxu3 %v1721_v43 }
 0x543   :  { %648 = vmatpush.msra.mxu3 %v1726_v44 }
 0x545   :  { %649 = vmatpush.msra.mxu3 %v1731_v45 }
 0x547   :  { %650 = vmatpush.msra.mxu3 %v1740_v46 }
 0x549   :  { %890 = vmatpush.msrb.mxu3 %v1618_v3 }
 0x54b   :  { %891 = vmatpush.msrb.mxu3 %v1623_v4 }
 0x54d   :  { %892 = vmatpush.msrb.mxu3 %v1630_v5 }
 0x54f   :  { %893 = vmatpush.msrb.mxu3 %v1637_v6 }
 0x551   :  { %894 = vmatpush.msrb.mxu3 %v1644_v7 }
 0x553   :  { %895 = vmatpush.msrb.mxu3 %v1651_v8 }
 0x555   :  { %896 = vmatpush.msrb.mxu3 %v1658_v9 }
 0x557   :  { %897 = vmatpush.msrb.mxu3 %v1669_v10 }
 0x59d   :  { %v425_v2 = vpop.f32.mrf.mxu2 }
 0x59e   :  { %v426_v11 = vadd.f32 %v1682_v13, %v425_v2 }
 0x5a0   :  { %1424 = vtanh.f32 %v426_v11  ;;  %v1360_v17 = vmul.f32 -1.442695, %v426_v11 }
 0x5a6   :  { %v1425_v12 = vpop.eup %1424 }
 0x5a7   :  { %450 = vrot.lane.b32.xlu0 %v1425_v12, %s1561_s26 }
 0x5bb   :  { %v336_v14 = vpop.f32.mrf.mxu3 }
 0x5bc   :  { %v337_v15 = vadd.f32 %v1774_v55, %v336_v14 }
 0x5be   :  { %1426 = vtanh.f32 %v337_v15  ;;  %v1356_v18 = vmul.f32 -1.442695, %v337_v15 }
 0x5bf   :  { %1428 = vpow2.f32 %v1360_v17 }
 0x5c0   :  { %1430 = vpow2.f32 %v1356_v18 }
 0x5c3   :  { %v556_v17 = vpop.f32.mrf.mxu3 }
 0x5c4   :  { %v1427_v16 = vpop.eup %1426 }
 0x5c5   :  { %361 = vrot.lane.b32.xlu2 %v1427_v16, %s1561_s26  ;;  %v1429_v19 = vpop.eup %1428 }
 0x5c6   :  { %v431_v20 = vadd.f32 1.0, %v1429_v19  ;;  %v1431_v21 = vpop.eup %1430 }
 0x5c7   :  { %v342_v22 = vadd.f32 1.0, %v1431_v21 }
 0x5c8   :  { %1432 = vrcp.f32 %v431_v20  ;;  %v443_v31 = vand.u32 2147483648, %v431_v20  ;;  %vm437_vm3 = vweird.f32 %v431_v20  ;;  %v441_v32 = vand.u32 2147483647, %v431_v20 }
 0x5c9   :  { %1434 = vrcp.f32 %v342_v22  ;;  %v354_v49 = vand.u32 2147483648, %v342_v22  ;;  %vm348_vm7 = vweird.f32 %v342_v22  ;;  %v352_v50 = vand.u32 2147483647, %v342_v22 }
 0x5ca   :  { %v444_v36 = vor.u32 1.1754944e-38, %v443_v31  ;;  %vm442_vm5 = vcmp.eq.f32.partialorder %v441_v32, 8.507059e+37 }
 0x5cb   :  { %v355_v53 = vor.u32 1.1754944e-38, %v354_v49  ;;  %vm353_vm9 = vcmp.eq.f32.partialorder %v352_v50, 8.507059e+37 }
 0x5ce   :  { %v1433_v23 = vpop.eup %1432 }
 0x5cf   :  { %v433_v24 = vmul.f32 %v1433_v23, %v431_v20  ;;  %v1435_v25 = vpop.eup %1434  ;;  %vm438_vm15 = vweird.f32 %v1433_v23 }
 0x5d0   :  { %v344_v27 = vmul.f32 %v1435_v25, %v342_v22  ;;  %vm439_vm4 = vmor %vm437_vm3, %vm438_vm15  ;;  %vm349_vm6 = vweird.f32 %v1435_v25 }
 0x5d1   :  { %v434_v26 = vsub.f32 1.0, %v433_v24  ;;  %vm350_vm8 = vmor %vm348_vm7, %vm349_vm6 }
 0x5d2   :  { %v345_v29 = vsub.f32 1.0, %v344_v27 }
 0x5d3   :  { %v435_v28 = vmul.f32 %v1433_v23, %v434_v26 }
 0x5d4   :  { %v346_v33 = vmul.f32 %v1435_v25, %v345_v29 }
 0x5d5   :  { %v436_v30 = vadd.f32 %v1433_v23, %v435_v28 }
 0x5d6   :  { %v347_v37 = vadd.f32 %v1435_v25, %v346_v33 }
 0x5d7   :  { %v440_v34 = vsel %vm439_vm4, %v1433_v23, %v436_v30 }
 0x5d8   :  { %v445_v38 = vsel %vm442_vm5, %v444_v36, %v440_v34  ;;  %v351_v52 = vsel %vm350_vm8, %v1435_v25, %v347_v37 }
 0x5d9   :  { %v356_v56 = vsel %vm353_vm9, %v355_v53, %v351_v52  ;;  %v448_v58 = vmul.f32 %v445_v38, %v1781_v47 }
 0x5da   :  { %v359_v47 = vmul.f32 %v356_v56, %v1797_v51 }
 0x619   :  { %v451_v48 = vpop.permute.xlu0 %450 }
 0x61a   :  { %v453_v35 = vmul.f32 %v451_v48, %v445_v38 }
 0x61c   :  { %455 = vrot.lane.b32.xlu2 %v453_v35, %s1562_s27 }
 0x61f   :  { %v362_v54 = vpop.permute.xlu2 %361 }
 0x620   :  { %v364_v57 = vmul.f32 %v362_v54, %v356_v56 }
 0x622   :  { %366 = vrot.lane.b32.xlu1 %v364_v57, %s1562_s27 }
 0x676   :  { %v456_v59 = vpop.permute.xlu2 %455 }
 0x677   :  { %v1825_v60 = vadd.f32 %v456_v59, %v448_v58 }
 0x679   :  { %1436 = vtanh.f32 %v1825_v60 }
 0x67f   :  { %v1437_v62 = vpop.eup %1436 }
 0x680   :  { %461 = vrot.lane.b32.xlu1 %v1437_v62, %s1561_s26 }
 0x694   :  { %v367_v63 = vpop.permute.xlu1 %366 }
 0x695   :  { %v1842_v2 = vadd.f32 %v367_v63, %v359_v47 }
 0x697   :  { %1438 = vtanh.f32 %v1842_v2 }
 0x69d   :  { %v1439_v11 = vpop.eup %1438 }
 0x69e   :  { %372 = vrot.lane.b32.xlu0 %v1439_v11, %s1561_s26 }
 0x6f2   :  { %v462_v12 = vpop.permute.xlu1 %461 }
 0x6f3   :  { %v464_v14 = vmul.f32 %v462_v12, %v445_v38 }
 0x6f5   :  { %559 = vrot.lane.b32.xlu1 %v464_v14, %s1561_s26  ;;  %466 = vrot.lane.b32.xlu2 %v464_v14, %s1562_s27 }
 0x710   :  { %v373_v15 = vpop.permute.xlu0 %372 }
 0x711   :  { %v375_v16 = vmul.f32 %v373_v15, %v356_v56 }
 0x713   :  { %470 = vrot.lane.b32.xlu0 %v375_v16, %s1561_s26 }
 0x74f   :  { %v467_v19 = vpop.permute.xlu2 %466 }
 0x767   :  { %v560_v51 = vpop.permute.xlu1 %559 }
 0x768   :  { %v562_v18 = vsel %vm84_vm1, %v556_v17, %v560_v51  ;;  %v1369_v51 = vld [vmem:[%s2045_s0 + $0x20] sm:$0xff] }
 0x769   :  { %1365 = vmatmul.msk.f32.vlgmr.msrb.gmra.mxu1 %vm89_vm2, %v562_v18  ;;  %1370 = vmatmul.msk.f32.vlgmr.msra.gmra.mxu2 %vm60_vm0, %v1369_v51 }
 0x76a   :  { %1048 = vmatpush.msrb.mxu1 %v1618_v3  ;;  %959 = vmatpush.msra.mxu2 %v1705_v39 }
 0x76c   :  { %1049 = vmatpush.msrb.mxu1 %v1623_v4  ;;  %960 = vmatpush.msra.mxu2 %v1707_v40 }
 0x76e   :  { %1050 = vmatpush.msrb.mxu1 %v1630_v5  ;;  %961 = vmatpush.msra.mxu2 %v1711_v41 }
 0x770   :  { %1051 = vmatpush.msrb.mxu1 %v1637_v6  ;;  %962 = vmatpush.msra.mxu2 %v1716_v42 }
 0x772   :  { %1052 = vmatpush.msrb.mxu1 %v1644_v7  ;;  %963 = vmatpush.msra.mxu2 %v1721_v43 }
 0x774   :  { %1053 = vmatpush.msrb.mxu1 %v1651_v8  ;;  %964 = vmatpush.msra.mxu2 %v1726_v44 }
 0x776   :  { %1054 = vmatpush.msrb.mxu1 %v1658_v9  ;;  %965 = vmatpush.msra.mxu2 %v1731_v45 }
 0x778   :  { %1055 = vmatpush.msrb.mxu1 %v1669_v10  ;;  %966 = vmatpush.msra.mxu2 %v1740_v46 }
 0x785   :  { %v471_v20 = vpop.permute.xlu0 %470 }
 0x786   :  { %v473_v21 = vsel %vm84_vm1, %v467_v19, %v471_v20 }
 0x787   :  { %1361 = vmatmul.msk.f32.vlgmr.msra.gmra.mxu0 %vm89_vm2, %v473_v21 }
 0x788   :  { %1027 = vmatpush.msra.mxu0 %v1604_v0 }
 0x78a   :  { %1028 = vmatpush.msra.mxu0 %v1609_v1 }
 0x7e6   :  { %v583_v3 = vpop.f32.mrf.mxu1 }
 0x7e7   :  { %v584_v4 = vadd.f32 %v1682_v13, %v583_v3 }
 0x7e9   :  { %1440 = vtanh.f32 %v584_v4  ;;  %v1366_v26 = vmul.f32 -1.442695, %v584_v4 }
 0x7ef   :  { %v1441_v22 = vpop.eup %1440 }
 0x7f0   :  { %608 = vrot.lane.b32.xlu0 %v1441_v22, %s1561_s26 }
 0x804   :  { %v494_v23 = vpop.f32.mrf.mxu0 }
 0x805   :  { %v495_v24 = vadd.f32 %v1774_v55, %v494_v23 }
 0x807   :  { %1442 = vtanh.f32 %v495_v24  ;;  %v1362_v27 = vmul.f32 -1.442695, %v495_v24  ;;  %v714_v24 = vpop.f32.mrf.mxu2 }
 0x808   :  { %1444 = vpow2.f32 %v1366_v26 }
 0x809   :  { %1446 = vpow2.f32 %v1362_v27 }
 0x80d   :  { %v1443_v25 = vpop.eup %1442 }
 0x80e   :  { %519 = vrot.lane.b32.xlu2 %v1443_v25, %s1561_s26  ;;  %v1445_v28 = vpop.eup %1444 }
 0x80f   :  { %v589_v29 = vadd.f32 1.0, %v1445_v28  ;;  %v1447_v30 = vpop.eup %1446 }
 0x810   :  { %v500_v31 = vadd.f32 1.0, %v1447_v30 }
 0x811   :  { %1448 = vrcp.f32 %v589_v29  ;;  %v601_v35 = vand.u32 2147483648, %v589_v29  ;;  %vm595_vm11 = vweird.f32 %v589_v29  ;;  %v599_v50 = vand.u32 2147483647, %v589_v29 }
 0x812   :  { %1450 = vrcp.f32 %v500_v31  ;;  %v512_v59 = vand.u32 2147483648, %v500_v31  ;;  %vm506_vm15 = vweird.f32 %v500_v31  ;;  %v510_v62 = vand.u32 2147483647, %v500_v31 }
 0x813   :  { %v602_v54 = vor.u32 1.1754944e-38, %v601_v35  ;;  %vm600_vm13 = vcmp.eq.f32.partialorder %v599_v50, 8.507059e+37 }
 0x814   :  { %v513_v63 = vor.u32 1.1754944e-38, %v512_v59  ;;  %vm511_vm4 = vcmp.eq.f32.partialorder %v510_v62, 8.507059e+37 }
 0x817   :  { %v1449_v32 = vpop.eup %1448 }
 0x818   :  { %v591_v33 = vmul.f32 %v1449_v32, %v589_v29  ;;  %v1451_v34 = vpop.eup %1450  ;;  %vm596_vm10 = vweird.f32 %v1449_v32 }
 0x819   :  { %v502_v37 = vmul.f32 %v1451_v34, %v500_v31  ;;  %vm597_vm12 = vmor %vm595_vm11, %vm596_vm10  ;;  %vm507_vm14 = vweird.f32 %v1451_v34 }
 0x81a   :  { %v592_v36 = vsub.f32 1.0, %v591_v33  ;;  %vm508_vm3 = vmor %vm506_vm15, %vm507_vm14 }
 0x81b   :  { %v503_v48 = vsub.f32 1.0, %v502_v37 }
 0x81c   :  { %v593_v38 = vmul.f32 %v1449_v32, %v592_v36 }
 0x81d   :  { %v504_v52 = vmul.f32 %v1451_v34, %v503_v48 }
 0x81e   :  { %v594_v49 = vadd.f32 %v1449_v32, %v593_v38 }
 0x81f   :  { %v505_v56 = vadd.f32 %v1451_v34, %v504_v52 }
 0x820   :  { %v598_v53 = vsel %vm597_vm12, %v1449_v32, %v594_v49 }
 0x821   :  { %v603_v57 = vsel %vm600_vm13, %v602_v54, %v598_v53  ;;  %v509_v47 = vsel %vm508_vm3, %v1451_v34, %v505_v56 }
 0x822   :  { %v514_v12 = vsel %vm511_vm4, %v513_v63, %v509_v47  ;;  %v606_v15 = vmul.f32 %v603_v57, %v1825_v60 }
 0x823   :  { %v517_v60 = vmul.f32 %v514_v12, %v1842_v2 }
 0x862   :  { %v609_v58 = vpop.permute.xlu0 %608 }
 0x863   :  { %v611_v61 = vmul.f32 %v609_v58, %v603_v57 }
 0x865   :  { %613 = vrot.lane.b32.xlu2 %v611_v61, %s1562_s27 }
 0x868   :  { %v520_v11 = vpop.permute.xlu2 %519 }
 0x869   :  { %v522_v14 = vmul.f32 %v520_v11, %v514_v12 }
 0x86b   :  { %524 = vrot.lane.b32.xlu1 %v522_v14, %s1562_s27 }
 0x8bf   :  { %v614_v16 = vpop.permute.xlu2 %613 }
 0x8c0   :  { %v1870_v17 = vadd.f32 %v614_v16, %v606_v15 }
 0x8c2   :  { %1452 = vtanh.f32 %v1870_v17 }
 0x8c8   :  { %v1453_v18 = vpop.eup %1452 }
 0x8c9   :  { %619 = vrot.lane.b32.xlu1 %v1453_v18, %s1561_s26 }
 0x8dd   :  { %v525_v19 = vpop.permute.xlu1 %524 }
 0x8de   :  { %v1887_v20 = vadd.f32 %v525_v19, %v517_v60 }
 0x8e0   :  { %1454 = vtanh.f32 %v1887_v20 }
 0x8e6   :  { %v1455_v21 = vpop.eup %1454 }
 0x8e7   :  { %530 = vrot.lane.b32.xlu0 %v1455_v21, %s1561_s26 }
 0x93b   :  { %v620_v3 = vpop.permute.xlu1 %619 }
 0x93c   :  { %v622_v4 = vmul.f32 %v620_v3, %v603_v57 }
 0x93e   :  { %717 = vrot.lane.b32.xlu1 %v622_v4, %s1561_s26  ;;  %624 = vrot.lane.b32.xlu2 %v622_v4, %s1562_s27 }
 0x959   :  { %v531_v22 = vpop.permute.xlu0 %530 }
 0x95a   :  { %v533_v23 = vmul.f32 %v531_v22, %v514_v12 }
 0x95c   :  { %628 = vrot.lane.b32.xlu0 %v533_v23, %s1561_s26  ;;  %v1375_v23 = vld [vmem:[%s2045_s0 + $0x28] sm:$0xff] }
 0x95d   :  { %1376 = vmatmul.msk.f32.vlgmr.msrb.gmra.mxu2 %vm60_vm0, %v1375_v23 }
 0x998   :  { %v625_v26 = vpop.permute.xlu2 %624 }
 0x9b0   :  { %v718_v2 = vpop.permute.xlu1 %717 }
 0x9b1   :  { %v720_v25 = vsel %vm84_vm1, %v714_v24, %v718_v2  ;;  %v1528_v24 = vld [vmem:[%s2047_s2 + $0x38] sm:$0xff] }
 0x9b2   :  { %1371 = vmatmul.msk.f32.vlgmr.msrb.gmra.mxu0 %vm89_vm2, %v720_v25  ;;  %1206 = vmatpush.msrb.mxu2 %v1528_v24 }
 0x9b3   :  { %1117 = vmatpush.msrb.mxu0 %v1705_v39 }
 0x9b5   :  { %1118 = vmatpush.msrb.mxu0 %v1707_v40 }
 0x9b7   :  { %1119 = vmatpush.msrb.mxu0 %v1711_v41 }
 0x9b9   :  { %1120 = vmatpush.msrb.mxu0 %v1716_v42 }
 0x9bb   :  { %1121 = vmatpush.msrb.mxu0 %v1721_v43 }
 0x9bd   :  { %1122 = vmatpush.msrb.mxu0 %v1726_v44 }
 0x9bf   :  { %1123 = vmatpush.msrb.mxu0 %v1731_v45 }
 0x9c1   :  { %1124 = vmatpush.msrb.mxu0 %v1740_v46 }
 0x9ce   :  { %v629_v27 = vpop.permute.xlu0 %628 }
 0x9cf   :  { %v631_v28 = vsel %vm84_vm1, %v625_v26, %v629_v27 }
 0x9d0   :  { %1367 = vmatmul.msk.f32.vlgmr.msra.gmra.mxu3 %vm89_vm2, %v631_v28 }
 0x9d1   :  { %1185 = vmatpush.msra.mxu3 %v1604_v0 }
 0x9d3   :  { %1186 = vmatpush.msra.mxu3 %v1609_v1 }
 0xa2f   :  { %v741_v29 = vpop.f32.mrf.mxu0 }
 0xa30   :  { %v742_v30 = vadd.f32 %v1682_v13, %v741_v29 }
 0xa32   :  { %1456 = vtanh.f32 %v742_v30  ;;  %v1372_v36 = vmul.f32 -1.442695, %v742_v30 }
 0xa38   :  { %v1457_v31 = vpop.eup %1456 }
 0xa39   :  { %766 = vrot.lane.b32.xlu2 %v1457_v31, %s1561_s26 }
 0xa53   :  { %v652_v32 = vpop.f32.mrf.mxu3 }
 0xa54   :  { %v653_v33 = vadd.f32 %v1774_v55, %v652_v32 }
 0xa56   :  { %1458 = vtanh.f32 %v653_v33  ;;  %v1368_v58 = vmul.f32 -1.442695, %v653_v33 }
 0xa57   :  { %1460 = vpow2.f32 %v1372_v36 }
 0xa5c   :  { %v1459_v34 = vpop.eup %1458 }
 0xa5d   :  { %677 = vrot.lane.b32.xlu0 %v1459_v34, %s1561_s26  ;;  %v1461_v37 = vpop.eup %1460 }
 0xa5e   :  { %v747_v0 = vadd.f32 1.0, %v1461_v37 }
 0xa60   :  { %1462 = vrcp.f32 %v747_v0  ;;  %v759_v35 = vand.u32 2147483648, %v747_v0  ;;  %vm753_vm6 = vweird.f32 %v747_v0  ;;  %v757_v50 = vand.u32 2147483647, %v747_v0 }
 0xa61   :  { %1464 = vpow2.f32 %v1368_v58 }
 0xa62   :  { %v760_v53 = vor.u32 1.1754944e-38, %v759_v35  ;;  %vm758_vm8 = vcmp.eq.f32.partialorder %v757_v50, 8.507059e+37 }
 0xa66   :  { %v1463_v1 = vpop.eup %1462 }
 0xa67   :  { %v749_v38 = vmul.f32 %v1463_v1, %v747_v0  ;;  %vm754_vm5 = vweird.f32 %v1463_v1  ;;  %v1465_v59 = vpop.eup %1464 }
 0xa68   :  { %vm755_vm7 = vmor %vm753_vm6, %vm754_vm5  ;;  %v658_v61 = vadd.f32 1.0, %v1465_v59 }
 0xa69   :  { %v750_v48 = vsub.f32 1.0, %v749_v38 }
 0xa6a   :  { %1466 = vrcp.f32 %v658_v61  ;;  %v670_v14 = vand.u32 2147483648, %v658_v61  ;;  %vm664_vm10 = vweird.f32 %v658_v61  ;;  %v668_v15 = vand.u32 2147483647, %v658_v61 }
 0xa6b   :  { %v751_v13 = vmul.f32 %v1463_v1, %v750_v48 }
 0xa6c   :  { %v671_v51 = vor.u32 1.1754944e-38, %v670_v14  ;;  %vm669_vm12 = vcmp.eq.f32.partialorder %v668_v15, 8.507059e+37 }
 0xa6d   :  { %v752_v49 = vadd.f32 %v1463_v1, %v751_v13 }
 0xa6f   :  { %v756_v52 = vsel %vm755_vm7, %v1463_v1, %v752_v49 }
 0xa70   :  { %v761_v54 = vsel %vm758_vm8, %v760_v53, %v756_v52  ;;  %v1467_v62 = vpop.eup %1466 }
 0xa71   :  { %v660_v47 = vmul.f32 %v1467_v62, %v658_v61  ;;  %vm665_vm9 = vweird.f32 %v1467_v62  ;;  %v764_v21 = vmul.f32 %v761_v54, %v1870_v17  ;;  %v1529_v17 = vld [vmem:[%s2047_s2 + $0x30] sm:$0xff] }
 0xa72   :  { %vm666_vm11 = vmor %vm664_vm10, %vm665_vm9  ;;  %1207 = vmatpush.msrb.mxu2 %v1529_v17 }
 0xa73   :  { %v661_v63 = vsub.f32 1.0, %v660_v47 }
 0xa74   :  { %1208 = vmatpush.msrb.mxu2 %v1630_v5 }
 0xa75   :  { %v662_v11 = vmul.f32 %v1467_v62, %v661_v63 }
 0xa76   :  { %1209 = vmatpush.msrb.mxu2 %v1637_v6 }
 0xa77   :  { %v663_v12 = vadd.f32 %v1467_v62, %v662_v11 }
 0xa78   :  { %1210 = vmatpush.msrb.mxu2 %v1644_v7 }
 0xa79   :  { %v667_v16 = vsel %vm666_vm11, %v1467_v62, %v663_v12 }
 0xa7a   :  { %v672_v60 = vsel %vm669_vm12, %v671_v51, %v667_v16  ;;  %1211 = vmatpush.msrb.mxu2 %v1651_v8 }
 0xa7b   :  { %v675_v2 = vmul.f32 %v672_v60, %v1887_v20 }
 0xa7c   :  { %1212 = vmatpush.msrb.mxu2 %v1658_v9  ;;  %v872_v9 = vpop.f32.mrf.mxu2 }
 0xa7e   :  { %1213 = vmatpush.msrb.mxu2 %v1669_v10 }
 0xa93   :  { %v767_v56 = vpop.permute.xlu2 %766 }
 0xa94   :  { %v769_v57 = vmul.f32 %v767_v56, %v761_v54 }
 0xa96   :  { %771 = vrot.lane.b32.xlu1 %v769_v57, %s1562_s27 }
 0xacf   :  { %v678_v18 = vpop.permute.xlu0 %677 }
 0xad0   :  { %v680_v19 = vmul.f32 %v678_v18, %v672_v60 }
 0xad2   :  { %682 = vrot.lane.b32.xlu2 %v680_v19, %s1562_s27  ;;  %v1381_v19 = vld [vmem:[%s2045_s0 + $0x30] sm:$0xff] }
 0xad3   :  { %1382 = vmatmul.msk.f32.vlgmr.msra.gmra.mxu0 %vm60_vm0, %v1381_v19 }
 0xb08   :  { %v772_v3 = vpop.permute.xlu1 %771 }
 0xb09   :  { %v1915_v4 = vadd.f32 %v772_v3, %v764_v21 }
 0xb0b   :  { %1468 = vtanh.f32 %v1915_v4 }
 0xb11   :  { %v1469_v22 = vpop.eup %1468 }
 0xb12   :  { %777 = vrot.lane.b32.xlu0 %v1469_v22, %s1561_s26 }
 0xb2c   :  { %v683_v25 = vpop.permute.xlu2 %682 }
 0xb2d   :  { %v1936_v26 = vadd.f32 %v683_v25, %v675_v2 }
 0xb2f   :  { %1470 = vtanh.f32 %v1936_v26 }
 0xb35   :  { %v1471_v27 = vpop.eup %1470 }
 0xb36   :  { %688 = vrot.lane.b32.xlu1 %v1471_v27, %s1561_s26 }
 0xb50   :  { %v1030_v25 = vpop.f32.mrf.mxu0 }
 0xb84   :  { %v778_v5 = vpop.permute.xlu0 %777 }
 0xb85   :  { %v780_v6 = vmul.f32 %v778_v5, %v761_v54 }
 0xb87   :  { %782 = vrot.lane.b32.xlu0 %v780_v6, %s1562_s27  ;;  %875 = vrot.lane.b32.xlu2 %v780_v6, %s1561_s26 }
 0xba8   :  { %v689_v7 = vpop.permute.xlu1 %688 }
 0xba9   :  { %v691_v8 = vmul.f32 %v689_v7, %v672_v60 }
 0xbab   :  { %786 = vrot.lane.b32.xlu1 %v691_v8, %s1561_s26 }
 0xbe1   :  { %v876_v10 = vpop.permute.xlu2 %875 }
 0xbe2   :  { %v878_v20 = vsel %vm84_vm1, %v872_v9, %v876_v10 }
 0xbe3   :  { %1377 = vmatmul.msk.f32.vlgmr.msrb.gmra.mxu3 %vm89_vm2, %v878_v20 }
 0xbe4   :  { %1275 = vmatpush.msrb.mxu3 %v1705_v39 }
 0xbe6   :  { %1276 = vmatpush.msrb.mxu3 %v1707_v40  ;;  %v1958_v40 = vld [vmem:[%s2048_s3] ss:$0 sm:$0xff] }
 0xbe8   :  { %1277 = vmatpush.msrb.mxu3 %v1711_v41 }
 0xbea   :  { %1278 = vmatpush.msrb.mxu3 %v1716_v42 }
 0xbec   :  { %1279 = vmatpush.msrb.mxu3 %v1721_v43 }
 0xbee   :  { %1280 = vmatpush.msrb.mxu3 %v1726_v44 }
 0xbf0   :  { %1281 = vmatpush.msrb.mxu3 %v1731_v45 }
 0xbf2   :  { %1282 = vmatpush.msrb.mxu3 %v1740_v46 }
 0xbf9   :  { %v783_v28 = vpop.permute.xlu0 %782 }
 0xc1d   :  { %v787_v29 = vpop.permute.xlu1 %786 }
 0xc1e   :  { %v789_v30 = vsel %vm84_vm1, %v783_v28, %v787_v29 }
 0xc1f   :  { %1373 = vmatmul.msk.f32.vlgmr.msra.gmra.mxu1 %vm89_vm2, %v789_v30 }
 0xc66   :  { %v899_v39 = vpop.f32.mrf.mxu3 }
 0xc67   :  { %v900_v41 = vadd.f32 %v1958_v40, %v899_v39 }
 0xc69   :  { %1472 = vtanh.f32 %v900_v41  ;;  %v1378_v46 = vmul.f32 -1.442695, %v900_v41 }
 0xc6f   :  { %v1473_v42 = vpop.eup %1472 }
 0xc70   :  { %924 = vrot.lane.b32.xlu0 %v1473_v42, %s1561_s26 }
 0xc9c   :  { %v810_v43 = vpop.f32.mrf.mxu1 }
 0xc9d   :  { %v811_v44 = vadd.f32 %v1774_v55, %v810_v43 }
 0xc9f   :  { %1474 = vtanh.f32 %v811_v44  ;;  %v1374_v36 = vmul.f32 -1.442695, %v811_v44 }
 0xca0   :  { %1476 = vpow2.f32 %v1378_v46 }
 0xca5   :  { %v1475_v45 = vpop.eup %1474 }
 0xca6   :  { %835 = vrot.lane.b32.xlu2 %v1475_v45, %s1561_s26  ;;  %v1477_v31 = vpop.eup %1476 }
 0xca7   :  { %v905_v32 = vadd.f32 1.0, %v1477_v31 }
 0xca9   :  { %1478 = vrcp.f32 %v905_v32  ;;  %v917_v38 = vand.u32 2147483648, %v905_v32  ;;  %vm911_vm14 = vweird.f32 %v905_v32  ;;  %v915_v13 = vand.u32 2147483647, %v905_v32 }
 0xcaa   :  { %1480 = vpow2.f32 %v1374_v36 }
 0xcab   :  { %v918_v50 = vor.u32 1.1754944e-38, %v917_v38  ;;  %vm916_vm3 = vcmp.eq.f32.partialorder %v915_v13, 8.507059e+37 }
 0xcaf   :  { %v1479_v33 = vpop.eup %1478 }
 0xcb0   :  { %v907_v34 = vmul.f32 %v1479_v33, %v905_v32  ;;  %vm912_vm13 = vweird.f32 %v1479_v33  ;;  %v1481_v48 = vpop.eup %1480 }
 0xcb1   :  { %vm913_vm15 = vmor %vm911_vm14, %vm912_vm13  ;;  %v816_v35 = vadd.f32 1.0, %v1481_v48 }
 0xcb2   :  { %v908_v37 = vsub.f32 1.0, %v907_v34 }
 0xcb3   :  { %1482 = vrcp.f32 %v816_v35  ;;  %v828_v62 = vand.u32 2147483648, %v816_v35  ;;  %vm822_vm5 = vweird.f32 %v816_v35  ;;  %v826_v47 = vand.u32 2147483647, %v816_v35 }
 0xcb4   :  { %v909_v0 = vmul.f32 %v1479_v33, %v908_v37 }
 0xcb5   :  { %v829_v11 = vor.u32 1.1754944e-38, %v828_v62  ;;  %vm827_vm7 = vcmp.eq.f32.partialorder %v826_v47, 8.507059e+37 }
 0xcb6   :  { %v910_v1 = vadd.f32 %v1479_v33, %v909_v0 }
 0xcb8   :  { %v914_v49 = vsel %vm913_vm15, %v1479_v33, %v910_v1 }
 0xcb9   :  { %v919_v53 = vsel %vm916_vm3, %v918_v50, %v914_v49  ;;  %v1483_v56 = vpop.eup %1482 }
 0xcba   :  { %v818_v57 = vmul.f32 %v1483_v56, %v816_v35  ;;  %vm823_vm4 = vweird.f32 %v1483_v56  ;;  %v922_v16 = vmul.f32 %v919_v53, %v1915_v4 }
 0xcbb   :  { %vm824_vm6 = vmor %vm822_vm5, %vm823_vm4 }
 0xcbc   :  { %v819_v58 = vsub.f32 1.0, %v818_v57 }
 0xcbe   :  { %v820_v59 = vmul.f32 %v1483_v56, %v819_v58 }
 0xcc0   :  { %v821_v61 = vadd.f32 %v1483_v56, %v820_v59 }
 0xcc2   :  { %v825_v63 = vsel %vm824_vm6, %v1483_v56, %v821_v61 }
 0xcc3   :  { %v830_v14 = vsel %vm827_vm7, %v829_v11, %v825_v63  ;;  %v1387_v11 = vld [vmem:[%s2045_s0 + $0x38] sm:$0xff] }
 0xcc4   :  { %v833_v21 = vmul.f32 %v830_v14, %v1936_v26  ;;  %1388 = vmatmul.msk.f32.vlgmr.msra.gmra.mxu3 %vm60_vm0, %v1387_v11 }
 0xce2   :  { %v925_v52 = vpop.permute.xlu0 %924 }
 0xce3   :  { %v927_v54 = vmul.f32 %v925_v52, %v919_v53 }
 0xce5   :  { %929 = vrot.lane.b32.xlu2 %v927_v54, %s1562_s27 }
 0xd00   :  { %v836_v12 = vpop.permute.xlu2 %835 }
 0xd01   :  { %v838_v15 = vmul.f32 %v836_v12, %v830_v14 }
 0xd03   :  { %840 = vrot.lane.b32.xlu1 %v838_v15, %s1562_s27 }
 0xd3f   :  { %v930_v51 = vpop.permute.xlu2 %929 }
 0xd40   :  { %v1967_v18 = vadd.f32 %v930_v51, %v922_v16 }
 0xd42   :  { %1484 = vtanh.f32 %v1967_v18 }
 0xd48   :  { %v1485_v60 = vpop.eup %1484 }
 0xd49   :  { %935 = vrot.lane.b32.xlu1 %v1485_v60, %s1561_s26 }
 0xd75   :  { %v841_v3 = vpop.permute.xlu1 %840 }
 0xd76   :  { %v1976_v22 = vadd.f32 %v841_v3, %v833_v21  ;;  %v1188_v21 = vpop.f32.mrf.mxu3 }
 0xd78   :  { %1486 = vtanh.f32 %v1976_v22 }
 0xd7e   :  { %v1487_v4 = vpop.eup %1486 }
 0xd7f   :  { %846 = vrot.lane.b32.xlu0 %v1487_v4, %s1561_s26 }
 0xdbb   :  { %v936_v23 = vpop.permute.xlu1 %935 }
 0xdbc   :  { %v938_v24 = vmul.f32 %v936_v23, %v919_v53 }
 0xdbe   :  { %1033 = vrot.lane.b32.xlu1 %v938_v24, %s1561_s26  ;;  %940 = vrot.lane.b32.xlu2 %v938_v24, %s1562_s27 }
 0xdf1   :  { %v847_v17 = vpop.permute.xlu0 %846 }
 0xdf2   :  { %v849_v2 = vmul.f32 %v847_v17, %v830_v14 }
 0xdf4   :  { %944 = vrot.lane.b32.xlu0 %v849_v2, %s1561_s26 }
 0xe18   :  { %v941_v5 = vpop.permute.xlu2 %940 }
 0xe30   :  { %v1034_v26 = vpop.permute.xlu1 %1033 }
 0xe31   :  { %v1036_v27 = vsel %vm84_vm1, %v1030_v25, %v1034_v26 }
 0xe32   :  { %1383 = vmatmul.msk.f32.vlgmr.msrb.gmra.mxu1 %vm89_vm2, %v1036_v27 }
 0xe66   :  { %v945_v6 = vpop.permute.xlu0 %944 }
 0xe67   :  { %v947_v7 = vsel %vm84_vm1, %v941_v5, %v945_v6  ;;  %v2019_v5 = vld [vmem:[%s2050_s5] ss:$0 sm:$0xff] }
 0xe68   :  { %1379 = vmatmul.msk.f32.vlgmr.msra.gmra.mxu2 %vm89_vm2, %v947_v7 }
 0xeaf   :  { %v1057_v8 = vpop.f32.mrf.mxu1 }
 0xeb0   :  { %v1058_v9 = vadd.f32 %v1958_v40, %v1057_v8 }
 0xeb2   :  { %1488 = vtanh.f32 %v1058_v9  ;;  %v1384_v20 = vmul.f32 -1.442695, %v1058_v9 }
 0xeb4   :  { %1490 = vpow2.f32 %v1384_v20 }
 0xeb8   :  { %v1489_v10 = vpop.eup %1488 }
 0xeb9   :  { %1082 = vrot.lane.b32.xlu2 %v1489_v10, %s1561_s26 }
 0xeba   :  { %v1491_v30 = vpop.eup %1490 }
 0xebb   :  { %v1063_v39 = vadd.f32 1.0, %v1491_v30 }
 0xebd   :  { %v1075_v31 = vand.u32 2147483648, %v1063_v39  ;;  %vm1069_vm9 = vweird.f32 %v1063_v39  ;;  %v1073_v32 = vand.u32 2147483647, %v1063_v39 }
 0xebf   :  { %v1076_v34 = vor.u32 1.1754944e-38, %v1075_v31  ;;  %vm1074_vm11 = vcmp.eq.f32.partialorder %v1073_v32, 8.507059e+37 }
 0xeeb   :  { %v968_v28 = vpop.f32.mrf.mxu2 }
 0xeec   :  { %v969_v29 = vadd.f32 %v1774_v55, %v968_v28 }
 0xeee   :  { %1492 = vtanh.f32 %v969_v29  ;;  %v1380_v0 = vmul.f32 -1.442695, %v969_v29 }
 0xeef   :  { %1494 = vrcp.f32 %v1063_v39 }
 0xef0   :  { %1496 = vpow2.f32 %v1380_v0 }
 0xef4   :  { %v1493_v41 = vpop.eup %1492 }
 0xef5   :  { %993 = vrot.lane.b32.xlu0 %v1493_v41, %s1561_s26  ;;  %v1495_v42 = vpop.eup %1494 }
 0xef6   :  { %v1065_v43 = vmul.f32 %v1495_v42, %v1063_v39  ;;  %vm1070_vm8 = vweird.f32 %v1495_v42  ;;  %v1497_v1 = vpop.eup %1496 }
 0xef7   :  { %vm1071_vm10 = vmor %vm1069_vm9, %vm1070_vm8  ;;  %v974_v38 = vadd.f32 1.0, %v1497_v1 }
 0xef8   :  { %v1066_v44 = vsub.f32 1.0, %v1065_v43 }
 0xef9   :  { %1498 = vrcp.f32 %v974_v38  ;;  %v986_v52 = vand.u32 2147483648, %v974_v38  ;;  %vm980_vm13 = vweird.f32 %v974_v38  ;;  %v984_v53 = vand.u32 2147483647, %v974_v38 }
 0xefa   :  { %v1067_v45 = vmul.f32 %v1495_v42, %v1066_v44 }
 0xefb   :  { %v987_v56 = vor.u32 1.1754944e-38, %v986_v52  ;;  %vm985_vm15 = vcmp.eq.f32.partialorder %v984_v53, 8.507059e+37 }
 0xefc   :  { %v1068_v46 = vadd.f32 %v1495_v42, %v1067_v45 }
 0xefe   :  { %v1072_v33 = vsel %vm1071_vm10, %v1495_v42, %v1068_v46 }
 0xeff   :  { %v1077_v55 = vsel %vm1074_vm11, %v1076_v34, %v1072_v33  ;;  %v1499_v48 = vpop.eup %1498 }
 0xf00   :  { %v976_v13 = vmul.f32 %v1499_v48, %v974_v38  ;;  %vm981_vm12 = vweird.f32 %v1499_v48  ;;  %v1080_v61 = vmul.f32 %v1077_v55, %v1967_v18 }
 0xf01   :  { %vm982_vm14 = vmor %vm980_vm13, %vm981_vm12 }
 0xf02   :  { %v977_v49 = vsub.f32 1.0, %v976_v13 }
 0xf04   :  { %v978_v35 = vmul.f32 %v1499_v48, %v977_v49 }
 0xf06   :  { %v979_v50 = vadd.f32 %v1499_v48, %v978_v35 }
 0xf08   :  { %v983_v54 = vsel %vm982_vm14, %v1499_v48, %v979_v50  ;;  %vm1338_vm14 = vcmask 785408  }
 0xf09   :  { %v988_v58 = vsel %vm985_vm15, %v987_v56, %v983_v54 }
 0xf0a   :  { %v991_v12 = vmul.f32 %v988_v58, %v1976_v22 }
 0xf13   :  { %v1083_v36 = vpop.permute.xlu2 %1082 }
 0xf14   :  { %v1085_v37 = vmul.f32 %v1083_v36, %v1077_v55 }
 0xf16   :  { %1087 = vrot.lane.b32.xlu1 %v1085_v37, %s1562_s27 }
 0xf67   :  { %v994_v57 = vpop.permute.xlu0 %993 }
 0xf68   :  { %v996_v59 = vmul.f32 %v994_v57, %v988_v58 }
 0xf6a   :  { %998 = vrot.lane.b32.xlu2 %v996_v59, %s1562_s27 }
 0xf88   :  { %v1088_v62 = vpop.permute.xlu1 %1087 }
 0xf89   :  { %v1994_v47 = vadd.f32 %v1088_v62, %v1080_v61 }
 0xf8b   :  { %1500 = vtanh.f32 %v1994_v47 }
 0xf91   :  { %v1501_v63 = vpop.eup %1500 }
 0xf92   :  { %1093 = vrot.lane.b32.xlu0 %v1501_v63, %s1561_s26 }
 0xfc4   :  { %v999_v14 = vpop.permute.xlu2 %998 }
 0xfc5   :  { %v2003_v15 = vadd.f32 %v999_v14, %v991_v12 }
 0xfc7   :  { %1502 = vtanh.f32 %v2003_v15 }
 0xfcd   :  { %v1503_v16 = vpop.eup %1502 }
 0xfce   :  { %1004 = vrot.lane.b32.xlu1 %v1503_v16, %s1561_s26 }
0x1004   :  { %v1094_v51 = vpop.permute.xlu0 %1093 }
0x1005   :  { %v1096_v18 = vmul.f32 %v1094_v51, %v1077_v55 }
0x1007   :  { %1098 = vrot.lane.b32.xlu0 %v1096_v18, %s1562_s27  ;;  %1191 = vrot.lane.b32.xlu2 %v1096_v18, %s1561_s26 }
0x1040   :  { %v1005_v60 = vpop.permute.xlu1 %1004 }
0x1041   :  { %v1007_v19 = vmul.f32 %v1005_v60, %v988_v58 }
0x1043   :  { %1102 = vrot.lane.b32.xlu1 %v1007_v19, %s1561_s26 }
0x1061   :  { %v1192_v3 = vpop.permute.xlu2 %1191 }
0x1062   :  { %v1194_v22 = vsel %vm84_vm1, %v1188_v21, %v1192_v3 }
0x1063   :  { %1389 = vmatmul.msk.f32.vlgmr.msrb.gmra.mxu2 %vm89_vm2, %v1194_v22 }
0x1079   :  { %v1099_v4 = vpop.permute.xlu0 %1098 }
0x10b5   :  { %v1103_v23 = vpop.permute.xlu1 %1102 }
0x10b6   :  { %v1105_v24 = vsel %vm84_vm1, %v1099_v4, %v1103_v23 }
0x10b7   :  { %1385 = vmatmul.msk.f32.vlgmr.msrb.gmra.mxu0 %vm89_vm2, %v1105_v24 }
0x10e6   :  { %v1215_v17 = vpop.f32.mrf.mxu2 }
0x10e7   :  { %v1216_v2 = vadd.f32 %v1958_v40, %v1215_v17 }
0x10e9   :  { %1504 = vtanh.f32 %v1216_v2  ;;  %v1390_v27 = vmul.f32 -1.442695, %v1216_v2 }
0x10ef   :  { %v1505_v25 = vpop.eup %1504 }
0x10f0   :  { %1240 = vrot.lane.b32.xlu0 %v1505_v25, %s1561_s26 }
0x1134   :  { %v1126_v26 = vpop.f32.mrf.mxu0 }
0x1135   :  { %v1127_v6 = vadd.f32 %v2019_v5, %v1126_v26 }
0x1137   :  { %1506 = vtanh.f32 %v1127_v6  ;;  %v1386_v46 = vmul.f32 -1.442695, %v1127_v6 }
0x1138   :  { %1508 = vpow2.f32 %v1390_v27 }
0x113d   :  { %v1507_v7 = vpop.eup %1506 }
0x113e   :  { %1151 = vrot.lane.b32.xlu2 %v1507_v7, %s1561_s26  ;;  %v1509_v8 = vpop.eup %1508 }
0x113f   :  { %v1221_v40 = vadd.f32 1.0, %v1509_v8 }
0x1141   :  { %1510 = vrcp.f32 %v1221_v40  ;;  %v1233_v30 = vand.u32 2147483648, %v1221_v40  ;;  %vm1227_vm3 = vweird.f32 %v1221_v40  ;;  %v1231_v39 = vand.u32 2147483647, %v1221_v40 }
0x1142   :  { %1512 = vpow2.f32 %v1386_v46 }
0x1143   :  { %v1234_v42 = vor.u32 1.1754944e-38, %v1233_v30  ;;  %vm1232_vm5 = vcmp.eq.f32.partialorder %v1231_v39, 8.507059e+37 }
0x1147   :  { %v1511_v9 = vpop.eup %1510 }
0x1148   :  { %v1223_v10 = vmul.f32 %v1511_v9, %v1221_v40  ;;  %vm1228_vm0 = vweird.f32 %v1511_v9  ;;  %v1513_v31 = vpop.eup %1512 }
0x1149   :  { %vm1229_vm4 = vmor %vm1227_vm3, %vm1228_vm0  ;;  %v1132_v32 = vadd.f32 1.0, %v1513_v31 }
0x114a   :  { %v1224_v20 = vsub.f32 1.0, %v1223_v10 }
0x114b   :  { %1514 = vrcp.f32 %v1132_v32  ;;  %v1144_v0 = vand.u32 2147483648, %v1132_v32  ;;  %vm1138_vm7 = vweird.f32 %v1132_v32  ;;  %v1142_v1 = vand.u32 2147483647, %v1132_v32 }
0x114c   :  { %v1225_v28 = vmul.f32 %v1511_v9, %v1224_v20 }
0x114d   :  { %v1145_v48 = vor.u32 1.1754944e-38, %v1144_v0  ;;  %vm1143_vm9 = vcmp.eq.f32.partialorder %v1142_v1, 8.507059e+37 }
0x114e   :  { %v1226_v29 = vadd.f32 %v1511_v9, %v1225_v28 }
0x1150   :  { %v1230_v41 = vsel %vm1229_vm4, %v1511_v9, %v1226_v29 }
0x1151   :  { %v1235_v44 = vsel %vm1232_vm5, %v1234_v42, %v1230_v41  ;;  %v1515_v33 = vpop.eup %1514 }
0x1152   :  { %v1134_v34 = vmul.f32 %v1515_v33, %v1132_v32  ;;  %vm1139_vm6 = vweird.f32 %v1515_v33  ;;  %v1238_v50 = vmul.f32 %v1235_v44, %v1994_v47 }
0x1153   :  { %vm1140_vm8 = vmor %vm1138_vm7, %vm1139_vm6 }
0x1154   :  { %v1135_v55 = vsub.f32 1.0, %v1134_v34 }
0x1156   :  { %v1136_v36 = vmul.f32 %v1515_v33, %v1135_v55 }
0x1158   :  { %v1137_v37 = vadd.f32 %v1515_v33, %v1136_v36 }
0x115a   :  { %v1141_v38 = vsel %vm1140_vm8, %v1515_v33, %v1137_v37 }
0x115b   :  { %v1146_v49 = vsel %vm1143_vm9, %v1145_v48, %v1141_v38 }
0x115c   :  { %v1149_v56 = vmul.f32 %v1146_v49, %v2003_v15 }
0x1162   :  { %v1241_v43 = vpop.permute.xlu0 %1240 }
0x1163   :  { %v1243_v45 = vmul.f32 %v1241_v43, %v1235_v44 }
0x1165   :  { %1245 = vrot.lane.b32.xlu2 %v1243_v45, %s1562_s27 }
0x1198   :  { %v1152_v13 = vpop.permute.xlu2 %1151 }
0x1199   :  { %v1154_v35 = vmul.f32 %v1152_v13, %v1146_v49 }
0x119b   :  { %1156 = vrot.lane.b32.xlu1 %v1154_v35, %s1562_s27 }
0x11bf   :  { %v1246_v52 = vpop.permute.xlu2 %1245 }
0x11c0   :  { %v1248_v53 = vadd.f32 %v1246_v52, %v1238_v50 }
0x11c2   :  { %1516 = vtanh.f32 %v1248_v53 }
0x11c8   :  { %v1517_v54 = vpop.eup %1516 }
0x11c9   :  { %1251 = vrot.lane.b32.xlu1 %v1517_v54, %s1561_s26 }
0x120d   :  { %v1157_v57 = vpop.permute.xlu1 %1156 }
0x120e   :  { %v1159_v58 = vadd.f32 %v1157_v57, %v1149_v56 }
0x1210   :  { %1518 = vtanh.f32 %v1159_v58 }
0x1216   :  { %v1519_v59 = vpop.eup %1518 }
0x1217   :  { %1162 = vrot.lane.b32.xlu0 %v1519_v59, %s1561_s26 }
0x123b   :  { %v1252_v61 = vpop.permute.xlu1 %1251 }
0x123c   :  { %v1254_v62 = vmul.f32 %v1252_v61, %v1235_v44 }
0x123e   :  { %1256 = vrot.lane.b32.xlu2 %v1254_v62, %s1562_s27 }
0x1289   :  { %v1163_v63 = vpop.permute.xlu0 %1162 }
0x128a   :  { %v1165_v47 = vmul.f32 %v1163_v63, %v1146_v49 }
0x128c   :  { %1260 = vrot.lane.b32.xlu0 %v1165_v47, %s1561_s26 }
0x1298   :  { %v1257_v11 = vpop.permute.xlu2 %1256 }
0x12fe   :  { %v1261_v12 = vpop.permute.xlu0 %1260 }
0x12ff   :  { %v1263_v14 = vsel %vm84_vm1, %v1257_v11, %v1261_v12 }
0x1300   :  { %1391 = vmatmul.msk.f32.vlgmr.msrb.gmra.mxu3 %vm89_vm2, %v1263_v14 }
0x1383   :  { %v1284_v15 = vpop.f32.mrf.mxu3 }
0x1384   :  { %v1285_v16 = vadd.f32 %v2019_v5, %v1284_v15 }
0x1386   :  { %1520 = vtanh.f32 %v1285_v16  ;;  %v1392_v18 = vmul.f32 -1.442695, %v1285_v16 }
0x1388   :  { %1522 = vpow2.f32 %v1392_v18 }
0x138c   :  { %v1521_v51 = vpop.eup %1520 }
0x138d   :  { %1309 = vrot.lane.b32.xlu1 %v1521_v51, %s1561_s26 }
0x138e   :  { %v1523_v60 = vpop.eup %1522 }
0x138f   :  { %v1290_v19 = vadd.f32 1.0, %v1523_v60 }
0x1391   :  { %1524 = vrcp.f32 %v1290_v19  ;;  %v1302_v24 = vand.u32 2147483648, %v1290_v19  ;;  %vm1296_vm11 = vweird.f32 %v1290_v19  ;;  %v1300_v17 = vand.u32 2147483647, %v1290_v19 }
0x1393   :  { %v1303_v25 = vor.u32 1.1754944e-38, %v1302_v24  ;;  %vm1301_vm13 = vcmp.eq.f32.partialorder %v1300_v17, 8.507059e+37 }
0x1397   :  { %v1525_v21 = vpop.eup %1524 }
0x1398   :  { %v1292_v3 = vmul.f32 %v1525_v21, %v1290_v19  ;;  %vm1297_vm10 = vweird.f32 %v1525_v21 }
0x1399   :  { %vm1298_vm12 = vmor %vm1296_vm11, %vm1297_vm10 }
0x139a   :  { %v1293_v22 = vsub.f32 1.0, %v1292_v3 }
0x139c   :  { %v1294_v4 = vmul.f32 %v1525_v21, %v1293_v22 }
0x139e   :  { %v1295_v23 = vadd.f32 %v1525_v21, %v1294_v4 }
0x13a0   :  { %v1299_v2 = vsel %vm1298_vm12, %v1525_v21, %v1295_v23 }
0x13a1   :  { %v1304_v27 = vsel %vm1301_vm13, %v1303_v25, %v1299_v2 }
0x13a2   :  { %v1307_v6 = vmul.f32 %v1304_v27, %v1159_v58 }
0x13ff   :  { %v1310_v26 = vpop.permute.xlu1 %1309 }
0x1400   :  { %v1312_v5 = vmul.f32 %v1310_v26, %v1304_v27 }
0x1402   :  { %1314 = vrot.lane.b32.xlu2 %v1312_v5, %s1562_s27 }
0x140a   :  { %1329 = vrot.lane.b32.xlu2 %v1248_v53, %s1562_s27 }
0x145c   :  { %v1315_v7 = vpop.permute.xlu2 %1314 }
0x145d   :  { %v1317_v8 = vadd.f32 %v1315_v7, %v1307_v6 }
0x145f   :  { %1526 = vtanh.f32 %v1317_v8 }
0x1464   :  { %v1330_v28 = vpop.permute.xlu2 %1329 }
0x1465   :  { %v1527_v40 = vpop.eup %1526 }
0x1466   :  { %1320 = vrot.lane.b32.xlu0 %v1527_v40, %s1561_s26 }
0x146e   :  { %1333 = vrot.lane.b32.xlu0 %v1317_v8, %s1561_s26 }
0x14d8   :  { %v1321_v9 = vpop.permute.xlu0 %1320 }
0x14d9   :  { %v1323_v10 = vmul.f32 %v1321_v9, %v1304_v27 }
0x14db   :  { %1325 = vrot.lane.b32.xlu1 %v1323_v10, %s1561_s26 }
0x14e0   :  { %v1334_v30 = vpop.permute.xlu0 %1333 }
0x154d   :  { %v1326_v20 = vpop.permute.xlu1 %1325 }
0x154e   :  { %v1336_v29 = vsel %vm84_vm1, %v1257_v11, %v1326_v20 }
0x154f   :  { %v1337_v39 = vsel %vm89_vm2, %v1336_v29, %v1330_v28 }
0x1550   :  { %v1339_v41 = vsel %vm1338_vm14, %v1337_v39, %v1334_v30 }
0x1551   :  { %1340 = vst [vmem:[%s2051_s6] sm:$0xff] %v1339_v41 }
0x1552   :  { %1345 = vsyncpa [#allocation3], 1 }

</bundles_post_ra>
